<compile_context>
chip_gen: v5e
topology: v5e:2x2
jax: 0.10.0
libtpu: 0.0.40
codegen_flags: <defaults>
</compile_context>

<pallas_src>
import functools

import jax
import jax.numpy as jnp
import numpy as np
from jax.experimental import pallas as pl
from jax.experimental.pallas import tpu as pltpu

EPSILON = 1e-8


# ---------------------------------------------------------------------------
# Fused kernel: order-K graph diffusion + 1x1 channel-mixing conv, B samples
# per grid step.
# ---------------------------------------------------------------------------
def _fused_kernel(x_ref, ball_ref, w_ref, b_ref, o_ref, *,
                  b_blk, cp, vl, k_diff, include_self, compute_dtype):
    # x_ref:    (B*Cp, VL)      input rows ordered (b, c); VL = V*L lane-dense
    # ball_ref: (VL, K*VL)      concat_k kron((A^k)^T, I_L), compute_dtype
    # w_ref:    (c_out, G*Cp)   fused 1x1-conv weight (G = K [+1 if self])
    # b_ref:    (c_out, VL)     bias, pre-broadcast along lanes
    # o_ref:    (B, c_out, VL)  output block, input dtype
    x2d = x_ref[...]
    xc = x2d if x2d.dtype == compute_dtype else x2d.astype(compute_dtype)

    # --- graph diffusion: ONE lane-dense MXU matmul for all K orders -------
    # (B*Cp, VL) @ (VL, K*VL) -> f32 accumulation.
    d_all = jnp.dot(xc, ball_ref[...], preferred_element_type=jnp.float32)

    # --- stack groups [x?, d_1 .. d_K] as (B, G*Cp, VL) ---------------------
    # Cp % 8 == 0, so these reshapes are tile aligned (no relayout cost).
    parts = []
    if include_self:
        parts.append(xc.reshape(b_blk, cp, vl))
    for g in range(k_diff):                       # static unroll, K is small
        dg = d_all[:, g * vl:(g + 1) * vl].astype(compute_dtype)
        parts.append(dg.reshape(b_blk, cp, vl))
    z_all = jnp.concatenate(parts, axis=1)        # (B, G*Cp, VL)

    # --- fused 1x1 conv: ONE batched mix matmul, contraction dim = G*Cp ----
    w = w_ref[...]
    wb = jnp.broadcast_to(w, (b_blk,) + w.shape)                  # (B, c_out, G*Cp)
    acc = jnp.einsum('bop,bpn->bon', wb, z_all,
                     preferred_element_type=jnp.float32)           # (B, c_out, VL)

    acc = acc + b_ref[...][None]                                   # bias (f32)
    o_ref[...] = acc.astype(o_ref.dtype)


def _round_up(x, m):
    return ((x + m - 1) // m) * m


# ---------------------------------------------------------------------------
# Wrapper: trace-time operator prep (A^k powers, kron lift, fused weights),
# padding so all blocks/reshapes are tile aligned, and the pallas_call.
# ---------------------------------------------------------------------------
def spatial_conv_orderk(x, supports, weight, bias, *, order=2,
                        support_len=None, include_self=True,
                        compute_dtype=jnp.bfloat16):
    """x: (N, C, V, L) or (N, C, V); supports: (V, V) or list of (V, V);
    weight: (c_out, G*C, 1, 1); bias: (c_out,)."""
    squeeze = x.ndim < 4
    if squeeze:
        x = x[..., None]
    N, C, V, L = x.shape

    if not isinstance(supports, (list, tuple)):
        supports = [supports]
        supports = supports + [supports[0]] * ((support_len or 1) - 1)
    supports = list(supports)
    S = len(supports)
    K = S * order
    G = K + 1 if include_self else K
    VL = V * L
    c_out = weight.shape[0]
    out_dtype = x.dtype

    # ---- channel / batch padding so blocks & reshapes are tile aligned ----
    Cp = _round_up(max(C, 1), 8)
    B = max(1, min(N, max(8, -(-128 // Cp))))        # target B*Cp >= 128 rows

    def _step_bytes(b):                               # rough per-step VMEM use
        in_b = b * Cp * VL * jnp.dtype(x.dtype).itemsize
        out_b = b * c_out * VL * jnp.dtype(out_dtype).itemsize
        mid_b = b * (K + G) * Cp * VL * 4
        return 2 * in_b + 2 * out_b + mid_b

    while B > 1 and _step_bytes(B) > 24 * 2**20:      # keep well inside VMEM
        B //= 2
    Npad = _round_up(N, B)
    num_steps = Npad // B

    # ---- trace-time operator prep ------------------------------------------
    # kron((A^k)^T, I_L) turns einsum('ncvl,wv->ncwl', x, A^k) into a
    # lane-dense right-matmul on the (v, l) lane axis.  All K operators are
    # concatenated so the kernel issues a single diffusion matmul.
    eye_l = jnp.eye(L, dtype=jnp.float32)
    mats = []
    for a in supports:
        a = jnp.asarray(a, jnp.float32)
        ak = a
        for k in range(order):
            if k > 0:
                ak = ak @ a                           # A^{k+1}
            mats.append(jnp.kron(ak.T, eye_l))        # (VL, VL)
    ball_cat = jnp.concatenate(mats, axis=1).astype(compute_dtype)  # (VL, K*VL)

    # fused 1x1-conv weight: groups ordered [x?, s0k1, s0k2, ..., s1k1, ...],
    # each group's C channels zero-padded to Cp.
    w2d = weight.reshape(c_out, -1)[:, :G * C].astype(jnp.float32)
    w_g = w2d.reshape(c_out, G, C)
    w_g = jnp.pad(w_g, ((0, 0), (0, 0), (0, Cp - C)))
    w_mix = w_g.reshape(c_out, G * Cp).astype(compute_dtype)

    bias_b = jnp.broadcast_to(
        bias.astype(jnp.float32).reshape(c_out, 1), (c_out, VL))

    # input: zero-pad N -> Npad and C -> Cp, then lane-dense rows (b, c).
    xp = jnp.pad(x, ((0, Npad - N), (0, Cp - C), (0, 0), (0, 0)))
    x2 = xp.reshape(Npad * Cp, VL)

    kernel = functools.partial(
        _fused_kernel, b_blk=B, cp=Cp, vl=VL, k_diff=K,
        include_self=include_self, compute_dtype=compute_dtype)

    vmem_limit = int(min(48 * 2**20, max(32 * 2**20, 4 * _step_bytes(B))))

    def build_call(single_buffer_consts):
        def const_spec(shape, imap):
            if single_buffer_consts:
                return pl.BlockSpec(shape, imap, pipeline_mode=pl.Buffered(1))
            return pl.BlockSpec(shape, imap)

        grid_spec = pltpu.PrefetchScalarGridSpec(
            num_scalar_prefetch=0,
            grid=(num_steps,),
            in_specs=[
                pl.BlockSpec((B * Cp, VL), lambda i: (i, 0)),
                const_spec((VL, K * VL), lambda i: (0, 0)),
                const_spec((c_out, G * Cp), lambda i: (0, 0)),
                const_spec((c_out, VL), lambda i: (0, 0)),
            ],
            out_specs=pl.BlockSpec((B, c_out, VL), lambda i: (i, 0, 0)),
        )
        return pl.pallas_call(
            kernel,
            out_shape=jax.ShapeDtypeStruct((Npad, c_out, VL), out_dtype),
            grid_spec=grid_spec,
            compiler_params=pltpu.CompilerParams(
                dimension_semantics=("parallel",),
                vmem_limit_bytes=vmem_limit),
        )

    try:
        out = build_call(True)(x2, ball_cat, w_mix, bias_b)
    except Exception:
        # Fallback for Pallas versions without BlockSpec(pipeline_mode=...):
        # default double-buffering of the (small) constant operands.
        out = build_call(False)(x2, ball_cat, w_mix, bias_b)

    out = out[:N].reshape(N, c_out, V, L)
    if squeeze:
        out = out[..., 0]
    return out


# ---------------------------------------------------------------------------
# Pure-JAX reference mirroring the PyTorch forward (correctness check)
# ---------------------------------------------------------------------------
def reference_forward(x, supports, weight, bias, *, order=2, include_self=True):
    out = [x] if include_self else []
    for a in supports:
        x1 = jnp.einsum('ncvl,wv->ncwl', x, a)
        out.append(x1)
        for _k in range(2, order + 1):
            x2 = jnp.einsum('ncvl,wv->ncwl', x1, a)
            out.append(x2)
            x1 = x2
    cat = jnp.concatenate(out, axis=1)
    w2d = weight.reshape(weight.shape[0], -1)
    return jnp.einsum('oc,ncvl->novl', w2d, cat) + bias.reshape(1, -1, 1, 1)


if __name__ == "__main__":
    key = jax.random.PRNGKey(0)
    # Small, but batched enough to exercise the B-per-step grid (B=16 -> 4 steps).
    N, C, V, L = 64, 4, 16, 8          # V*L = 128 -> lane-dense blocks
    order, support_len, include_self = 2, 1, True
    c_out = 8
    c_total = (order * support_len + 1) * C   # matches the module __init__

    k1, k2, k3, k4 = jax.random.split(key, 4)
    x = jax.random.normal(k1, (N, C, V, L), jnp.float32)
    adj = jax.random.uniform(k2, (V, V), jnp.float32)
    # SpatialConvOrderK.compute_support forward-normalized adjacency
    adj_fwd = adj / (adj.sum(1, keepdims=True) + EPSILON)
    supports = [adj_fwd]

    # Deterministic synthetic Conv2d(c_total -> c_out, kernel_size=1) params
    weight = jax.random.normal(k3, (c_out, c_total, 1, 1), jnp.float32) * 0.1
    bias = jax.random.normal(k4, (c_out,), jnp.float32) * 0.1

    out = spatial_conv_orderk(x, supports, weight, bias,
                              order=order, support_len=support_len,
                              include_self=include_self)
    out = jax.block_until_ready(out)
    assert out.shape == (N, c_out, V, L) and out.dtype == x.dtype

    ref = reference_forward(x, supports, weight, bias,
                            order=order, include_self=include_self)
    # bf16 MXU operands with f32 accumulation -> ~1e-3 expected deviation.
    np.testing.assert_allclose(np.asarray(out, np.float32), np.asarray(ref),
                               rtol=2e-2, atol=2e-2)
    print("KERNEL_OK")
</pallas_src>

<mosaic_0001>
module attributes {stable_mosaic.version = 11 : i64} {
  func.func @_fused_kernel(%arg0: i32, %arg1: memref<128x128xf32, #tpu.memory_space<vmem>>, %arg2: memref<128x256xbf16, #tpu.memory_space<vmem>>, %arg3: memref<8x24xbf16, #tpu.memory_space<vmem>>, %arg4: memref<8x128xf32, #tpu.memory_space<vmem>>, %arg5: memref<16x8x128xf32, #tpu.memory_space<vmem>>) attributes {dimension_semantics = [#tpu.dimension_semantics<parallel>], iteration_bounds = array<i64: 4>, scalar_prefetch = 0 : i64, scratch_operands = 0 : i64, tpu.core_type = #tpu.core_type<tc>, window_params = [{transform_indices = @transform_0, window_bounds = array<i64: 128, 128>}, {pipeline_mode = #tpu.pipeline_mode<synchronous>, transform_indices = @transform_1, window_bounds = array<i64: 128, 256>}, {pipeline_mode = #tpu.pipeline_mode<synchronous>, transform_indices = @transform_2, window_bounds = array<i64: 8, 24>}, {pipeline_mode = #tpu.pipeline_mode<synchronous>, transform_indices = @transform_3, window_bounds = array<i64: 8, 128>}, {transform_indices = @transform_4, window_bounds = array<i64: 16, 8, 128>}]} {
    %c0 = arith.constant 0 : index
    %c0_0 = arith.constant 0 : index
    %0 = vector.load %arg1[%c0, %c0_0] : memref<128x128xf32, #tpu.memory_space<vmem>>, vector<128x128xf32>
    %1 = arith.truncf %0 : vector<128x128xf32> to vector<128x128xbf16>
    %c0_1 = arith.constant 0 : index
    %c0_2 = arith.constant 0 : index
    %2 = vector.load %arg2[%c0_1, %c0_2] : memref<128x256xbf16, #tpu.memory_space<vmem>>, vector<128x256xbf16>
    %cst = arith.constant dense<0.000000e+00> : vector<128x256xf32>
    %3 = tpu.matmul %1, %2, %cst {dimension_numbers = #tpu.dot_dimension_numbers<[1], [0], [0], [1], [0, 0, 1, 1], [], []>} : vector<128x128xbf16>, vector<128x256xbf16>, vector<128x256xf32> -> vector<128x256xf32>
    %4 = vector.shape_cast %1 : vector<128x128xbf16> to vector<16x8x128xbf16>
    %5 = vector.extract_strided_slice %3 {offsets = [0, 0], sizes = [128, 128], strides = [1, 1]} : vector<128x256xf32> to vector<128x128xf32>
    %6 = arith.truncf %5 : vector<128x128xf32> to vector<128x128xbf16>
    %7 = vector.shape_cast %6 : vector<128x128xbf16> to vector<16x8x128xbf16>
    %8 = vector.extract_strided_slice %3 {offsets = [0, 128], sizes = [128, 128], strides = [1, 1]} : vector<128x256xf32> to vector<128x128xf32>
    %9 = arith.truncf %8 : vector<128x128xf32> to vector<128x128xbf16>
    %10 = vector.shape_cast %9 : vector<128x128xbf16> to vector<16x8x128xbf16>
    %11 = tpu.concatenate %4, %7, %10 in 1 : vector<16x8x128xbf16>, vector<16x8x128xbf16>, vector<16x8x128xbf16> -> vector<16x24x128xbf16>
    %c0_3 = arith.constant 0 : index
    %c0_4 = arith.constant 0 : index
    %12 = vector.load %arg3[%c0_3, %c0_4] : memref<8x24xbf16, #tpu.memory_space<vmem>>, vector<8x24xbf16>
    %13 = vector.shape_cast %12 : vector<8x24xbf16> to vector<1x8x24xbf16>
    %14 = vector.broadcast %13 : vector<1x8x24xbf16> to vector<16x8x24xbf16>
    "tpu.trace_start"() <{level = 10 : i32, message = "bop,bpn->bon"}> : () -> ()
    %cst_5 = arith.constant dense<0.000000e+00> : vector<16x8x128xf32>
    %15 = tpu.matmul %14, %11, %cst_5 {dimension_numbers = #tpu.dot_dimension_numbers<[2], [1], [1], [2], [0, 0, 0, 1, 1, 2], [0], [0]>} : vector<16x8x24xbf16>, vector<16x24x128xbf16>, vector<16x8x128xf32> -> vector<16x8x128xf32>
    "tpu.trace_stop"() : () -> ()
    %c0_6 = arith.constant 0 : index
    %c0_7 = arith.constant 0 : index
    %16 = vector.load %arg4[%c0_6, %c0_7] : memref<8x128xf32, #tpu.memory_space<vmem>>, vector<8x128xf32>
    %17 = vector.shape_cast %16 : vector<8x128xf32> to vector<1x8x128xf32>
    %18 = vector.broadcast %17 : vector<1x8x128xf32> to vector<16x8x128xf32>
    %19 = arith.addf %15, %18 : vector<16x8x128xf32>
    %c0_8 = arith.constant 0 : index
    %c0_9 = arith.constant 0 : index
    %c0_10 = arith.constant 0 : index
    %20 = vector.load %arg5[%c0_8, %c0_9, %c0_10] : memref<16x8x128xf32, #tpu.memory_space<vmem>>, vector<16x8x128xf32>
    tpu.vector_store %arg5[%c0_8, %c0_9, %c0_10], %19 {strides = array<i32>} : memref<16x8x128xf32, #tpu.memory_space<vmem>>, vector<16x8x128xf32>,
    return
  }
  func.func @transform_0(%arg0: i32) -> (i32, i32) {
    %c0_i32 = arith.constant 0 : i32
    %c0_i32_0 = arith.constant 0 : i32
    return %arg0, %c0_i32 : i32, i32
  }
  func.func @transform_1(%arg0: i32) -> (i32, i32) {
    %c0_i32 = arith.constant 0 : i32
    %c0_i32_0 = arith.constant 0 : i32
    %c0_i32_1 = arith.constant 0 : i32
    return %c0_i32, %c0_i32_0 : i32, i32
  }
  func.func @transform_2(%arg0: i32) -> (i32, i32) {
    %c0_i32 = arith.constant 0 : i32
    %c0_i32_0 = arith.constant 0 : i32
    %c0_i32_1 = arith.constant 0 : i32
    return %c0_i32, %c0_i32_0 : i32, i32
  }
  func.func @transform_3(%arg0: i32) -> (i32, i32) {
    %c0_i32 = arith.constant 0 : i32
    %c0_i32_0 = arith.constant 0 : i32
    %c0_i32_1 = arith.constant 0 : i32
    return %c0_i32, %c0_i32_0 : i32, i32
  }
  func.func @transform_4(%arg0: i32) -> (i32, i32, i32) {
    %c0_i32 = arith.constant 0 : i32
    %c0_i32_0 = arith.constant 0 : i32
    %c0_i32_1 = arith.constant 0 : i32
    return %arg0, %c0_i32, %c0_i32_0 : i32, i32, i32
  }
}

module attributes {stable_mosaic.version = 11 : i64} {
  func.func @_fused_kernel(%arg0: i32, %arg1: memref<128x128xf32, #tpu.memory_space<vmem>>, %arg2: memref<128x256xbf16, #tpu.memory_space<vmem>>, %arg3: memref<8x24xbf16, #tpu.memory_space<vmem>>, %arg4: memref<8x128xf32, #tpu.memory_space<vmem>>, %arg5: memref<16x8x128xf32, #tpu.memory_space<vmem>>) attributes {dimension_semantics = [#tpu.dimension_semantics<parallel>], iteration_bounds = array<i64: 4>, scalar_prefetch = 0 : i64, scratch_operands = 0 : i64, tpu.core_type = #tpu.core_type<tc>, window_params = [{transform_indices = @transform_0, window_bounds = array<i64: 128, 128>}, {pipeline_mode = #tpu.pipeline_mode<synchronous>, transform_indices = @transform_1, window_bounds = array<i64: 128, 256>}, {pipeline_mode = #tpu.pipeline_mode<synchronous>, transform_indices = @transform_2, window_bounds = array<i64: 8, 24>}, {pipeline_mode = #tpu.pipeline_mode<synchronous>, transform_indices = @transform_3, window_bounds = array<i64: 8, 128>}, {transform_indices = @transform_4, window_bounds = array<i64: 16, 8, 128>}]} {
    %c0 = arith.constant 0 : index
    %c0_0 = arith.constant 0 : index
    %0 = vector.load %arg1[%c0, %c0_0] : memref<128x128xf32, #tpu.memory_space<vmem>>, vector<128x128xf32>
    %1 = arith.truncf %0 : vector<128x128xf32> to vector<128x128xbf16>
    %c0_1 = arith.constant 0 : index
    %c0_2 = arith.constant 0 : index
    %2 = vector.load %arg2[%c0_1, %c0_2] : memref<128x256xbf16, #tpu.memory_space<vmem>>, vector<128x256xbf16>
    %cst = arith.constant dense<0.000000e+00> : vector<128x256xf32>
    %3 = tpu.matmul %1, %2, %cst {dimension_numbers = #tpu.dot_dimension_numbers<[1], [0], [0], [1], [0, 0, 1, 1], [], []>} : vector<128x128xbf16>, vector<128x256xbf16>, vector<128x256xf32> -> vector<128x256xf32>
    %4 = vector.shape_cast %1 : vector<128x128xbf16> to vector<16x8x128xbf16>
    %5 = vector.extract_strided_slice %3 {offsets = [0, 0], sizes = [128, 128], strides = [1, 1]} : vector<128x256xf32> to vector<128x128xf32>
    %6 = arith.truncf %5 : vector<128x128xf32> to vector<128x128xbf16>
    %7 = vector.shape_cast %6 : vector<128x128xbf16> to vector<16x8x128xbf16>
    %8 = vector.extract_strided_slice %3 {offsets = [0, 128], sizes = [128, 128], strides = [1, 1]} : vector<128x256xf32> to vector<128x128xf32>
    %9 = arith.truncf %8 : vector<128x128xf32> to vector<128x128xbf16>
    %10 = vector.shape_cast %9 : vector<128x128xbf16> to vector<16x8x128xbf16>
    %11 = tpu.concatenate %4, %7, %10 in 1 : vector<16x8x128xbf16>, vector<16x8x128xbf16>, vector<16x8x128xbf16> -> vector<16x24x128xbf16>
    %c0_3 = arith.constant 0 : index
    %c0_4 = arith.constant 0 : index
    %12 = vector.load %arg3[%c0_3, %c0_4] : memref<8x24xbf16, #tpu.memory_space<vmem>>, vector<8x24xbf16>
    %13 = vector.shape_cast %12 : vector<8x24xbf16> to vector<1x8x24xbf16>
    %14 = vector.broadcast %13 : vector<1x8x24xbf16> to vector<16x8x24xbf16>
    "tpu.trace_start"() <{level = 10 : i32, message = "bop,bpn->bon"}> : () -> ()
    %cst_5 = arith.constant dense<0.000000e+00> : vector<16x8x128xf32>
    %15 = tpu.matmul %14, %11, %cst_5 {dimension_numbers = #tpu.dot_dimension_numbers<[2], [1], [1], [2], [0, 0, 0, 1, 1, 2], [0], [0]>} : vector<16x8x24xbf16>, vector<16x24x128xbf16>, vector<16x8x128xf32> -> vector<16x8x128xf32>
    "tpu.trace_stop"() : () -> ()
    %c0_6 = arith.constant 0 : index
    %c0_7 = arith.constant 0 : index
    %16 = vector.load %arg4[%c0_6, %c0_7] : memref<8x128xf32, #tpu.memory_space<vmem>>, vector<8x128xf32>
    %17 = vector.shape_cast %16 : vector<8x128xf32> to vector<1x8x128xf32>
    %18 = vector.broadcast %17 : vector<1x8x128xf32> to vector<16x8x128xf32>
    %19 = arith.addf %15, %18 : vector<16x8x128xf32>
    %c0_8 = arith.constant 0 : index
    %c0_9 = arith.constant 0 : index
    %c0_10 = arith.constant 0 : index
    %20 = vector.load %arg5[%c0_8, %c0_9, %c0_10] : memref<16x8x128xf32, #tpu.memory_space<vmem>>, vector<16x8x128xf32>
    tpu.vector_store %arg5[%c0_8, %c0_9, %c0_10], %19 {strides = array<i32>} : memref<16x8x128xf32, #tpu.memory_space<vmem>>, vector<16x8x128xf32>,
    return
  }
  func.func @transform_0(%arg0: i32) -> (i32, i32) {
    %c0_i32 = arith.constant 0 : i32
    %c0_i32_0 = arith.constant 0 : i32
    return %arg0, %c0_i32 : i32, i32
  }
  func.func @transform_1(%arg0: i32) -> (i32, i32) {
    %c0_i32 = arith.constant 0 : i32
    %c0_i32_0 = arith.constant 0 : i32
    %c0_i32_1 = arith.constant 0 : i32
    return %c0_i32, %c0_i32_0 : i32, i32
  }
  func.func @transform_2(%arg0: i32) -> (i32, i32) {
    %c0_i32 = arith.constant 0 : i32
    %c0_i32_0 = arith.constant 0 : i32
    %c0_i32_1 = arith.constant 0 : i32
    return %c0_i32, %c0_i32_0 : i32, i32
  }
  func.func @transform_3(%arg0: i32) -> (i32, i32) {
    %c0_i32 = arith.constant 0 : i32
    %c0_i32_0 = arith.constant 0 : i32
    %c0_i32_1 = arith.constant 0 : i32
    return %c0_i32, %c0_i32_0 : i32, i32
  }
  func.func @transform_4(%arg0: i32) -> (i32, i32, i32) {
    %c0_i32 = arith.constant 0 : i32
    %c0_i32_0 = arith.constant 0 : i32
    %c0_i32_1 = arith.constant 0 : i32
    return %arg0, %c0_i32, %c0_i32_0 : i32, i32, i32
  }
}

</mosaic_0001>

<bundles_post_ra>
// kernel: tpu_custom_call.1
= control target key start
LH: loop header
LB: loop body
LE: loop exit
PB: predicated region body
PF: predicated region fallthrough
CT: control target
= control target key end

     0   :  { %9 = vsyncpa [#allocation3], 0  ;;  %s1860_s0 = inlined_call_operand.hbm [shape: f32[512,128], index: 0, kind: input, shape index: {}]   ;;  %s1861_s1 = inlined_call_operand.hbm [shape: bf16[128,256], index: 1, kind: input, shape index: {}]   ;;  %s1862_s2 = inlined_call_operand.hbm [shape: bf16[8,24], index: 2, kind: input, shape index: {}]   ;;  %s1863_s3 = inlined_call_operand.hbm [shape: f32[8,128], index: 3, kind: input, shape index: {}]   ;;  %s1864_s4 = inlined_call_operand.hbm [shape: f32[64,8,128], index: 4, kind: output, shape index: {}]  }
   0x1   :  { %11 = vsyncpa [#allocation3 + $0x1], 0 }
   0x2   :  { %12 = vsyncpa [#allocation6], 0 }
   0x3   :  { %13 = vsyncpa [#allocation9], 0 }
   0x4   :  { %14 = vsyncpa [#allocation4], 0 }
   0x5   :  { %16 = vsyncpa [#allocation4 + $0x1], 0  ;;  %s1509_s15 = smov 0   ;;  %s1511_s16 = smov 0  }
   0x6   :  { %s1513_s17 = smov 0   ;;  %s1515_s18 = smov 0  }
   0x7 LB: > { %s1530_s19 = sadd.s32 4294967295, %s1475_s18   ;;  %s1082_s20 = sadd.s32 4294967294, %s1475_s18   ;;  %s1475_s18 = sphi %s1515_s18, %s1874_s18   ;;  %s1471_s17 = sphi %s1513_s17, %s1873_s17   ;;  %s1467_s16 = sphi %s1511_s16, %s1872_s16   ;;  %s1463_s15 = sphi %s1509_s15, %s1871_s15  }
   0x8   : > { %p42_p0 = scmp.ne.s32.totalorder %s1467_s16, %s1463_s15  ;;  %p43_p1 = scmp.eq.s32.totalorder %s1530_s19, 0 }
   0x9   : > { %p129_p2 = scmp.eq.s32.totalorder %s1530_s19, 3  ;;  %p135_p3 = scmp.eq.s32.totalorder %s1082_s20, 3 }
   0xa   : > { %p1539_p4 = por %p43_p1, %p42_p0  ;;  %p1083_p5 = scmp.ge.s32.totalorder %s1475_s18, 1 }
   0xb   : > { %p1544_p6 = por %p135_p3, %p42_p0  ;;  %p142_p7 = scmp.lt.s32.totalorder %s1475_s18, 5 }
   0xc   : > { %s153_s25 = sshll.u32 %s1861_s1, 4  ;;  %s1477_s27 = smov [#allocation5]   ;;  %s154_s25 = int_to_ptr.hbm [resolvable:$true] %s153_s25 }
   0xd   : > { %p1552_p8 = pnand %p1083_p5, %p142_p7  ;;  %s155_s28 = sshll.u32 %s1477_s27, 4  ;;  %s156_s28 = int_to_ptr.vmem [resolvable:$true] %s155_s28 }
   0xe   : > { %s168_s6 = sshll.u32 %s1862_s2, 4  ;;  %s1478_s7 = smov 128   ;;  %s169_s6 = int_to_ptr.hbm [resolvable:$true] %s168_s6 }
   0xf   : > { %p1216_p9 = pneg %p1552_p8  ;;  %s1479_s8 = smov 8  }
  0x10   : > { %s1480_s9 = smov [#allocation7]   ;;  %s180_s13 = sshll.u32 %s1863_s3, 4  ;;  %s181_s13 = int_to_ptr.hbm [resolvable:$true] %s180_s13 }
  0x11   : > { %p1560_p10 = pnand %p1216_p9, %p43_p1  ;;  %s170_s10 = sshll.u32 %s1480_s9, 4  ;;  %s171_s10 = int_to_ptr.vmem [resolvable:$true] %s170_s10 }
  0x12   : > { %s1481_s14 = smov [#allocation8]   ;;  %s1578_s23 = sadd.s32 1, %s1475_s18  }
  0x13   : > { %1219 = dma.hbm_to_vmem [thread:$0]  (!%p1560_p10), %s154_s25, 2048, %s156_s28, [#allocation6], %s1478_s7, %s1478_s7, %s1479_s8  }
  0x14   : > { %1222 = dma.hbm_to_vmem [thread:$0]  (!%p1560_p10), %s169_s6, 64, %s171_s10, [#allocation6]  }
  0x15   : > { %s182_s20 = sshll.u32 %s1481_s14, 4  ;;  %s26_s24 = ssub.s32 %s1475_s18, %s1578_s23  ;;  %s183_s20 = int_to_ptr.vmem [resolvable:$true] %s182_s20 }
  0x16   : > { %1225 = dma.hbm_to_vmem [thread:$0]  (!%p1560_p10), %s181_s13, 128, %s183_s20, [#allocation9]  }
  0x17   : > { %s29_s25 = sadd.s32 1, %s1471_s17  ;;  %p27_p11 = scmp.eq.s32.totalorder %s26_s24, 0 }
  0x18   : > { %p36_p12 = scmp.ne.s32.totalorder %s1471_s17, %s1467_s16  ;;  %p37_p13 = scmp.eq.s32.totalorder %s1475_s18, 0 }
  0x19   : > { %s1589_s27 = scalar_select %p27_p11, %s1471_s17, %s29_s25  }
  0x1a   : > { %p1593_p0 = por %p129_p2, %p36_p12  ;;  %p1237_p3 = scmp.lt.s32.totalorder %s1475_s18, 4 }
  0x1b   : > { %s193_s30 = sand.u32 1, %s1471_s17   ;;  %s1182_s5 = sshll.u32 %s1475_s18, 7 }
  0x1c   : > { %p38_p5 = por %p37_p13, %p36_p12  ;;  %s1088_s6 = sshll.u32 %s193_s30, 7 }
  0x1d   : > { %s202_s10 = scalar_lea.hbm %s1860_s0, %s1182_s5  ;;  %s197_s12 = scalar_lea.vmem [#allocation2], %s1088_s6 }
  0x1e   : > { %s203_s11 = sshll.u32 %s202_s10, 4  ;;  %s205_s13 = sshll.u32 %s197_s12, 4  ;;  %s204_s11 = int_to_ptr.hbm [resolvable:$true] %s203_s11  ;;  %s206_s13 = int_to_ptr.vmem [resolvable:$true] %s205_s13 }
  0x1f   : > { %p1603_p7 = pnand %p1237_p3, %p38_p5  ;;  %s194_s20 = scalar_lea.sflag [#allocation3], %s193_s30 }
  0x20   : > { %s1371_s24 = sshra.s32 %s204_s11, 4  ;;  %s1378_s6 = scalar_lea.hbm %s1860_s0, 512  ;;  %s1372_s24 = int_to_ptr.hbm [resolvable:$true] %s1371_s24 }
  0x21   : > { %s1373_s25 = scalar_lea.hbm %s1372_s24, 128  ;;  %p1375_p9 = pneg %p1603_p7 }
  0x22   : > { %p1374_p2 = scmp.ne.s32.totalorder %s1372_s24, %s1373_s25  ;;  %p1379_p12 = scmp.lt.s32.totalorder %s1372_s24, %s1860_s0 }
  0x23   : > { %p1380_p13 = scmp.lt.s32.totalorder %s1378_s6, %s1373_s25 }
  0x24   : > { %p1376_p10 = pnand %p1375_p9, %p1374_p2 }
  0x25   : > { %p1381_p3 = por %p1380_p13, %p1379_p12 }
  0x26   : > { %p1377_p11 = pneg %p1376_p10 }
  0x28   : > { %p1382_p5 = pnand %p1381_p3, %p1377_p11 }
  0x2a   : > { %1385 = shalt.err (!%p1382_p5)
}
  0x2b   : > { %1229 = dma.hbm_to_vmem [thread:$0]  (!%p1603_p7), %s204_s11, 2048, %s206_s13, %s194_s20, %s1478_s7, %s1478_s7, %s1479_s8  }
  0x2c   : > { %217 = sbr.rel (%p1552_p8) target bundleno = 485 (0x1e5), region = 36  ;;  %s1623_s30 = sand.u32 (!%p1552_p8), 1, %s1467_s16  }
  0x2d   : > { %s1092_s12 = sshll.u32 (!%p1552_p8), %s1623_s30, 7  ;;  %s220_s24 = scalar_lea.sflag (!%p1552_p8), [#allocation3], %s1623_s30 }
  0x2e   : > { %s1629_s25 = scalar_lea.vmem (!%p1552_p8), [#allocation2], %s1092_s12 }
  0x31   : > { %1446 = dma.done.wait (%p1539_p4), %s220_s24, 2048  }
  0x32   : > { %1448 = vsyncadd (%p1539_p4), %s220_s24, 4294965248 }
  0x33   : > { %1450 = dma.done.wait (%p43_p1), [#allocation6], 2112  }
  0x34   : > { %1452 = vsyncadd (%p43_p1), [#allocation6], 4294965184 }
  0x35   : > { %1454 = dma.done.wait (%p43_p1), [#allocation9], 128  }
  0x36   : > { %1456 = vsyncadd (%p43_p1), [#allocation9], 4294967168  ;;  %v1155_v0 = vld [vmem:[#allocation5 + $0x70] sm:$0xf]  ;;  %v1198_v1 = vld [vmem:[#allocation5 + $0x74] sm:$0xf0] }
  0x37   : > { %v1197_v2 = vld [vmem:[#allocation5 + $0x74] sm:$0xf]  ;;  %v1156_v3 = vor.u32 %v1198_v1, %v1155_v0  ;;  %v1157_v4 = vld [vmem:[#allocation5 + $0x78] sm:$0xf0]  ;;  %v1147_v5 = vld [vmem:[#allocation5 + $0x60] sm:$0xf] }
  0x38   : > { %v1196_v6 = vld [vmem:[#allocation5 + $0x64] sm:$0xf0]  ;;  %v1160_v7 = vor.u32 %v1197_v2, %v1157_v4  ;;  %v1195_v8 = vld [vmem:[#allocation5 + $0x64] sm:$0xf]  ;;  %v1149_v9 = vld [vmem:[#allocation5 + $0x68] sm:$0xf0] }
  0x39   : > { %443 = vmatpush.bf16.msra.mxu0 %v1156_v3  ;;  %v1148_v10 = vor.u32 %v1196_v6, %v1147_v5  ;;  %v1152_v11 = vor.u32 %v1195_v8, %v1149_v9  ;;  %v1139_v12 = vld [vmem:[#allocation5 + $0x50] sm:$0xf]  ;;  %v1194_v13 = vld [vmem:[#allocation5 + $0x54] sm:$0xf0]  ;;  %v1193_v14 = vld [vmem:[#allocation5 + $0x54] sm:$0xf] }
  0x3a   : > { %492 = vmatpush.bf16.msra.mxu1 %v1160_v7  ;;  %v1141_v15 = vld [vmem:[#allocation5 + $0x58] sm:$0xf0]  ;;  %v1140_v16 = vor.u32 %v1194_v13, %v1139_v12  ;;  %v1131_v18 = vld [vmem:[#allocation5 + $0x40] sm:$0xf]  ;;  %v1192_v19 = vld [vmem:[#allocation5 + $0x44] sm:$0xf0] }
  0x3b   : > { %v1144_v17 = vor.u32 %v1193_v14, %v1141_v15  ;;  %v1191_v20 = vld [vmem:[#allocation5 + $0x44] sm:$0xf]  ;;  %v1133_v21 = vld [vmem:[#allocation5 + $0x48] sm:$0xf0]  ;;  %v1132_v22 = vor.u32 %v1192_v19, %v1131_v18  ;;  %v1123_v24 = vld [vmem:[#allocation5 + $0x30] sm:$0xf] }
  0x3c   : > { %v1136_v23 = vor.u32 %v1191_v20, %v1133_v21  ;;  %v1190_v25 = vld [vmem:[#allocation5 + $0x34] sm:$0xf0]  ;;  %v1189_v26 = vld [vmem:[#allocation5 + $0x34] sm:$0xf]  ;;  %v1125_v27 = vld [vmem:[#allocation5 + $0x38] sm:$0xf0] }
  0x3d   : > { %444 = vmatpush.bf16.msra.mxu0 %v1148_v10  ;;  %v1124_v28 = vor.u32 %v1190_v25, %v1123_v24  ;;  %v1128_v29 = vor.u32 %v1189_v26, %v1125_v27  ;;  %v1115_v30 = vld [vmem:[#allocation5 + $0x20] sm:$0xf]  ;;  %v1188_v31 = vld [vmem:[#allocation5 + $0x24] sm:$0xf0]  ;;  %v1187_v32 = vld [vmem:[#allocation5 + $0x24] sm:$0xf] }
  0x3e   : > { %493 = vmatpush.bf16.msra.mxu1 %v1152_v11  ;;  %v1117_v33 = vld [vmem:[#allocation5 + $0x28] sm:$0xf0]  ;;  %v1116_v34 = vor.u32 %v1188_v31, %v1115_v30  ;;  %v267_v35 = vld [vmem:[%s1629_s25] sm:$0xff]  ;;  %v1107_v38 = vld [vmem:[#allocation5 + $0x10] sm:$0xf]  ;;  %vm621_vm0 = vcmask 1043456  }
  0x3f   : > { %v268_v36 = vld [vmem:[%s1629_s25 + $0x8] sm:$0xff]  ;;  %v1120_v37 = vor.u32 %v1187_v32, %v1117_v33  ;;  %v1186_v39 = vld [vmem:[#allocation5 + $0x14] sm:$0xf0]  ;;  %v1185_v40 = vld [vmem:[#allocation5 + $0x14] sm:$0xf]  ;;  %v1645_v42 = vpack.c.bf16 %v267_v35, %v267_v35  ;;  %vm688_vm1 = vcmask 195584  }
  0x40   : > { %v1109_v41 = vld [vmem:[#allocation5 + $0x18] sm:$0xf0]  ;;  %v1647_v43 = vpack.c.bf16 %v268_v36, %v268_v36  ;;  %v1108_v44 = vor.u32 %v1186_v39, %v1107_v38  ;;  %v1099_v46 = vld [vmem:[#allocation5] sm:$0xf]  ;;  %v1184_v47 = vld [vmem:[#allocation5 + $0x4] sm:$0xf0] }
  0x41   : > { %445 = vmatpush.bf16.msra.mxu0 %v1140_v16  ;;  %v1112_v45 = vor.u32 %v1185_v40, %v1109_v41  ;;  %v1183_v48 = vld [vmem:[#allocation5 + $0x4] sm:$0xf]  ;;  %v1101_v49 = vld [vmem:[#allocation5 + $0x8] sm:$0xf0]  ;;  %v331_v50 = vunpack.c.l.b16 %v1645_v42  ;;  %v1100_v52 = vor.u32 %v1184_v47, %v1099_v46  ;;  %v269_v55 = vld [vmem:[%s1629_s25 + $0x10] sm:$0xff]  ;;  %s1794_s21 = scalar_lea.vmem [#allocation10], %s1092_s12 }
  0x42   : > { %494 = vmatpush.bf16.msra.mxu1 %v1144_v17  ;;  %v332_v51 = vunpack.c.l.b16 %v1647_v43  ;;  %v1104_v53 = vor.u32 %v1183_v48, %v1101_v49  ;;  %v270_v56 = vld [vmem:[%s1629_s25 + $0x18] sm:$0xff]  ;;  %v1653_v57 = vpack.c.bf16 %v269_v55, %v269_v55  ;;  %v271_v62 = vld [vmem:[%s1629_s25 + $0x20] sm:$0xff]  ;;  %v272_v63 = vld [vmem:[%s1629_s25 + $0x28] sm:$0xff]  ;;  %s1199_s26 = sshll.u32 %s1530_s19, 7  ;;  %s977_s13 = sshll.u32 %s1794_s21, 4  ;;  %s978_s13 = int_to_ptr.vmem [resolvable:$true] %s977_s13 }
  0x43   : > { %v1655_v58 = vpack.c.bf16 %v270_v56, %v270_v56  ;;  %v1661_v0 = vpack.c.bf16 %v271_v62, %v271_v62  ;;  %v1663_v1 = vpack.c.bf16 %v272_v63, %v272_v63  ;;  %v273_v5 = vld [vmem:[%s1629_s25 + $0x30] sm:$0xff]  ;;  %v274_v6 = vld [vmem:[%s1629_s25 + $0x38] sm:$0xff]  ;;  %v275_v12 = vld [vmem:[%s1629_s25 + $0x40] sm:$0xff]  ;;  %s976_s11 = scalar_lea.hbm %s1864_s4, %s1199_s26  ;;  %s965_s19 = scalar_lea.sflag [#allocation4], %s1623_s30 }
  0x44   : > { %v347_v54 = vpack.c.b16 %v332_v51, %v331_v50  ;;  %v333_v59 = vunpack.c.l.b16 %v1653_v57  ;;  %v1669_v7 = vpack.c.bf16 %v273_v5, %v273_v5  ;;  %v1671_v8 = vpack.c.bf16 %v274_v6, %v274_v6  ;;  %v276_v13 = vld [vmem:[%s1629_s25 + $0x48] sm:$0xff]  ;;  %v277_v19 = vld [vmem:[%s1629_s25 + $0x50] sm:$0xff]  ;;  %v278_v20 = vld [vmem:[%s1629_s25 + $0x58] sm:$0xff]  ;;  %s979_s14 = sshll.u32 %s976_s11, 4  ;;  %s1421_s9 = scalar_lea.hbm %s1864_s4, 512  ;;  %s980_s14 = int_to_ptr.hbm [resolvable:$true] %s979_s14 }
  0x45   : > { %446 = vmatpush.bf16.msra.mxu0 %v1132_v22  ;;  %v334_v60 = vunpack.c.l.b16 %v1655_v58  ;;  %v335_v2 = vunpack.c.l.b16 %v1661_v0  ;;  %v336_v3 = vunpack.c.l.b16 %v1663_v1  ;;  %v1677_v14 = vpack.c.bf16 %v275_v12, %v275_v12  ;;  %v279_v26 = vld [vmem:[%s1629_s25 + $0x60] sm:$0xff]  ;;  %v280_v27 = vld [vmem:[%s1629_s25 + $0x68] sm:$0xff]  ;;  %v281_v33 = vld [vmem:[%s1629_s25 + $0x70] sm:$0xff]  ;;  %s1415_s20 = sshra.s32 %s980_s14, 4  ;;  %s1416_s20 = int_to_ptr.hbm [resolvable:$true] %s1415_s20 }
  0x46   : > { %495 = vmatpush.bf16.msra.mxu1 %v1136_v23  ;;  %v337_v9 = vunpack.c.l.b16 %v1669_v7  ;;  %v338_v10 = vunpack.c.l.b16 %v1671_v8  ;;  %v1679_v15 = vpack.c.bf16 %v276_v13, %v276_v13  ;;  %v1685_v21 = vpack.c.bf16 %v277_v19, %v277_v19  ;;  %s1417_s5 = scalar_lea.hbm %s1416_s20, 128  ;;  %p1422_p7 = scmp.lt.s32.totalorder %s1416_s20, %s1864_s4 }
  0x47   : > { %v348_v61 = vpack.c.b16 %v334_v60, %v333_v59  ;;  %v349_v4 = vpack.c.b16 %v336_v3, %v335_v2  ;;  %v339_v16 = vunpack.c.l.b16 %v1677_v14  ;;  %v1687_v22 = vpack.c.bf16 %v278_v20, %v278_v20  ;;  %p1418_p1 = scmp.ne.s32.totalorder %s1416_s20, %s1417_s5  ;;  %p1423_p2 = scmp.lt.s32.totalorder %s1421_s9, %s1417_s5 }
  0x48   : > { %v350_v11 = vpack.c.b16 %v338_v10, %v337_v9  ;;  %v340_v17 = vunpack.c.l.b16 %v1679_v15  ;;  %v341_v23 = vunpack.c.l.b16 %v1685_v21  ;;  %v1701_v35 = vpack.c.bf16 %v281_v33, %v281_v33 }
  0x49   : > { %447 = vmatpush.bf16.msra.mxu0 %v1124_v28  ;;  %v342_v24 = vunpack.c.l.b16 %v1687_v22  ;;  %v1693_v28 = vpack.c.bf16 %v279_v26, %v279_v26  ;;  %p1419_p4 = pnand %p1418_p1, %p1593_p0  ;;  %p1424_p9 = por %p1423_p2, %p1422_p7 }
  0x4a   : > { %496 = vmatpush.bf16.msra.mxu1 %v1128_v29  ;;  %v351_v18 = vpack.c.b16 %v340_v17, %v339_v16  ;;  %v1695_v29 = vpack.c.bf16 %v280_v27, %v280_v27 }
  0x4b   : > { %v352_v25 = vpack.c.b16 %v342_v24, %v341_v23  ;;  %v343_v30 = vunpack.c.l.b16 %v1693_v28  ;;  %p1420_p8 = pneg %p1419_p4 }
  0x4c   : > { %v344_v31 = vunpack.c.l.b16 %v1695_v29 }
  0x4d   : > { %448 = vmatpush.bf16.msra.mxu0 %v1116_v34  ;;  %v282_v34 = vld [vmem:[%s1629_s25 + $0x78] sm:$0xff]  ;;  %p1425_p10 = pnand %p1424_p9, %p1420_p8 }
  0x4e   : > { %497 = vmatpush.bf16.msra.mxu1 %v1120_v37  ;;  %v353_v32 = vpack.c.b16 %v344_v31, %v343_v30  ;;  %v1703_v36 = vpack.c.bf16 %v282_v34, %v282_v34  ;;  %v345_v37 = vunpack.c.l.b16 %v1701_v35 }
  0x50   : > { %v346_v38 = vunpack.c.l.b16 %v1703_v36 }
  0x51   : > { %449 = vmatpush.bf16.msra.mxu0 %v1108_v44 }
  0x52   : > { %498 = vmatpush.bf16.msra.mxu1 %v1112_v45  ;;  %v354_v39 = vpack.c.b16 %v346_v38, %v345_v37 }
  0x55   : > { %450 = vmatpush.bf16.msra.mxu0 %v1100_v52 }
  0x56   : > { %499 = vmatpush.bf16.msra.mxu1 %v1104_v53  ;;  %v1710_v53 = vld [vmem:[#allocation7] sm:$0xf] }
  0x58   : > { %451 = vmatmul.bf16.vlgmr.msra.gmra.mxu0 %v347_v54 }
  0x59   : > { %500 = vmatmul.bf16.vlgmr.msra.gmra.mxu1 %v347_v54 }
  0x68   : > { %456 = vmatmul.bf16.gmra.mxu0 %v348_v61 }
  0x69   : > { %505 = vmatmul.bf16.gmra.mxu1 %v348_v61 }
  0x78   : > { %461 = vmatmul.bf16.gmra.mxu0 %v349_v4 }
  0x79   : > { %510 = vmatmul.bf16.gmra.mxu1 %v349_v4 }
  0x88   : > { %466 = vmatmul.bf16.gmra.mxu0 %v350_v11 }
  0x89   : > { %515 = vmatmul.bf16.gmra.mxu1 %v350_v11 }
  0x98   : > { %471 = vmatmul.bf16.gmra.mxu0 %v351_v18 }
  0x99   : > { %520 = vmatmul.bf16.gmra.mxu1 %v351_v18 }
  0xa8   : > { %476 = vmatmul.bf16.gmra.mxu0 %v352_v25 }
  0xa9   : > { %525 = vmatmul.bf16.gmra.mxu1 %v352_v25 }
  0xb8   : > { %481 = vmatmul.bf16.gmra.mxu0 %v353_v32 }
  0xb9   : > { %530 = vmatmul.bf16.gmra.mxu1 %v353_v32 }
  0xc8   : > { %486 = vmatmul.bf16.gmra.mxu0 %v354_v39 }
  0xc9   : > { %535 = vmatmul.bf16.gmra.mxu1 %v354_v39 }
  0xd5   : > { %v452_v40 = vpop.f32.mrf.mxu0 }
  0xd6   : > { %v541_v41 = vpack.c.bf16 %v452_v40, %v452_v40  ;;  %v501_v44 = vpop.f32.mrf.mxu1 }
  0xd7   : > { %v557_v45 = vpack.c.bf16 %v501_v44, %v501_v44 }
  0xd8   : > { %v589_v46 = vunpack.c.l.b16 %v541_v41 }
  0xd9   : > { %v693_v47 = vsel %vm621_vm0, %v557_v45, 0 }
  0xda   : > { %v605_v48 = vpack.c.b16 %v589_v46, %v589_v46  ;;  %701 = vmatpush.bf16.msra.mxu2 %v693_v47 }
  0xdc   : > { %v624_v49 = vsel %vm621_vm0, %v1645_v42, %v605_v48 }
  0xdd   : > { %v454_v50 = vpop.f32.mrf.mxu0 }
  0xde   : > { %v542_v51 = vpack.c.bf16 %v454_v50, %v454_v50  ;;  %v503_v52 = vpop.f32.mrf.mxu1  ;;  %702 = vmatpush.bf16.msra.mxu2 %v624_v49 }
  0xdf   : > { %v558_v54 = vpack.c.bf16 %v503_v52, %v503_v52 }
  0xe0   : > { %v590_v55 = vunpack.c.l.b16 %v542_v51 }
  0xe1   : > { %v709_v56 = vsel %vm621_vm0, %v558_v54, 0  ;;  %1161 = vmatmul.msk.bf16.vlgmr.msra.gmra.mxu2 %vm688_vm1, %v1710_v53 }
  0xe2   : > { %v606_v59 = vpack.c.b16 %v590_v55, %v590_v55  ;;  %717 = vmatpush.bf16.msra.mxu3 %v709_v56 }
  0xe4   : > { %v628_v60 = vsel %vm621_vm0, %v1647_v43, %v606_v59 }
  0xe5   : > { %v457_v42 = vpop.f32.mrf.mxu0 }
  0xe6   : > { %v543_v61 = vpack.c.bf16 %v457_v42, %v457_v42  ;;  %v506_v62 = vpop.f32.mrf.mxu1  ;;  %718 = vmatpush.bf16.msra.mxu3 %v628_v60 }
  0xe7   : > { %v559_v63 = vpack.c.bf16 %v506_v62, %v506_v62 }
  0xe8   : > { %v591_v2 = vunpack.c.l.b16 %v543_v61 }
  0xe9   : > { %1162 = vmatmul.msk.bf16.vlgmr.msra.gmra.mxu3 %vm688_vm1, %v1710_v53  ;;  %v725_v3 = vsel %vm621_vm0, %v559_v63, 0 }
  0xea   : > { %v607_v4 = vpack.c.b16 %v591_v2, %v591_v2  ;;  %733 = vmatpush.bf16.msrb.mxu2 %v725_v3 }
  0xec   : > { %v632_v5 = vsel %vm621_vm0, %v1653_v57, %v607_v4 }
  0xed   : > { %v459_v6 = vpop.f32.mrf.mxu0 }
  0xee   : > { %v544_v9 = vpack.c.bf16 %v459_v6, %v459_v6  ;;  %v508_v10 = vpop.f32.mrf.mxu1  ;;  %734 = vmatpush.bf16.msrb.mxu2 %v632_v5 }
  0xef   : > { %v560_v43 = vpack.c.bf16 %v508_v10, %v508_v10 }
  0xf0   : > { %v592_v11 = vunpack.c.l.b16 %v544_v9 }
  0xf1   : > { %v741_v12 = vsel %vm621_vm0, %v560_v43, 0  ;;  %1163 = vmatmul.msk.bf16.vlgmr.msrb.gmra.mxu2 %vm688_vm1, %v1710_v53 }
  0xf2   : > { %v608_v13 = vpack.c.b16 %v592_v11, %v592_v11  ;;  %749 = vmatpush.bf16.msrb.mxu3 %v741_v12 }
  0xf4   : > { %v636_v16 = vsel %vm621_vm0, %v1655_v58, %v608_v13 }
  0xf5   : > { %v462_v17 = vpop.f32.mrf.mxu0 }
  0xf6   : > { %v545_v18 = vpack.c.bf16 %v462_v17, %v462_v17  ;;  %v511_v19 = vpop.f32.mrf.mxu1  ;;  %750 = vmatpush.bf16.msrb.mxu3 %v636_v16 }
  0xf7   : > { %v561_v57 = vpack.c.bf16 %v511_v19, %v511_v19 }
  0xf8   : > { %v593_v20 = vunpack.c.l.b16 %v545_v18 }
  0xf9   : > { %v757_v23 = vsel %vm621_vm0, %v561_v57, 0  ;;  %1164 = vmatmul.msk.bf16.vlgmr.msrb.gmra.mxu3 %vm688_vm1, %v1710_v53 }
  0xfa   : > { %v609_v24 = vpack.c.b16 %v593_v20, %v593_v20  ;;  %765 = vmatpush.bf16.msra.mxu2 %v757_v23 }
  0xfc   : > { %v640_v25 = vsel %vm621_vm0, %v1661_v0, %v609_v24 }
  0xfd   : > { %v464_v26 = vpop.f32.mrf.mxu0 }
  0xfe   : > { %v546_v27 = vpack.c.bf16 %v464_v26, %v464_v26  ;;  %v513_v30 = vpop.f32.mrf.mxu1  ;;  %766 = vmatpush.bf16.msra.mxu2 %v640_v25 }
  0xff   : > { %v562_v58 = vpack.c.bf16 %v513_v30, %v513_v30 }
 0x100   : > { %v594_v31 = vunpack.c.l.b16 %v546_v27 }
 0x101   : > { %v773_v32 = vsel %vm621_vm0, %v562_v58, 0  ;;  %1165 = vmatmul.msk.bf16.vlgmr.msra.gmra.mxu2 %vm688_vm1, %v1710_v53 }
 0x102   : > { %v610_v33 = vpack.c.b16 %v594_v31, %v594_v31  ;;  %781 = vmatpush.bf16.msra.mxu3 %v773_v32 }
 0x104   : > { %v644_v34 = vsel %vm621_vm0, %v1663_v1, %v610_v33 }
 0x105   : > { %v467_v37 = vpop.f32.mrf.mxu0 }
 0x106   : > { %v547_v38 = vpack.c.bf16 %v467_v37, %v467_v37  ;;  %v516_v39 = vpop.f32.mrf.mxu1  ;;  %782 = vmatpush.bf16.msra.mxu3 %v644_v34 }
 0x107   : > { %v563_v0 = vpack.c.bf16 %v516_v39, %v516_v39 }
 0x108   : > { %v595_v40 = vunpack.c.l.b16 %v547_v38 }
 0x109   : > { %v789_v41 = vsel %vm621_vm0, %v563_v0, 0  ;;  %1166 = vmatmul.msk.bf16.vlgmr.msra.gmra.mxu3 %vm688_vm1, %v1710_v53 }
 0x10a   : > { %v611_v44 = vpack.c.b16 %v595_v40, %v595_v40  ;;  %797 = vmatpush.bf16.msrb.mxu2 %v789_v41 }
 0x10c   : > { %v648_v45 = vsel %vm621_vm0, %v1669_v7, %v611_v44 }
 0x10d   : > { %v469_v46 = vpop.f32.mrf.mxu0 }
 0x10e   : > { %v548_v47 = vpack.c.bf16 %v469_v46, %v469_v46  ;;  %v518_v48 = vpop.f32.mrf.mxu1  ;;  %798 = vmatpush.bf16.msrb.mxu2 %v648_v45 }
 0x10f   : > { %v564_v1 = vpack.c.bf16 %v518_v48, %v518_v48 }
 0x110   : > { %v596_v49 = vunpack.c.l.b16 %v548_v47 }
 0x111   : > { %v805_v50 = vsel %vm621_vm0, %v564_v1, 0  ;;  %1167 = vmatmul.msk.bf16.vlgmr.msrb.gmra.mxu2 %vm688_vm1, %v1710_v53 }
 0x112   : > { %v612_v51 = vpack.c.b16 %v596_v49, %v596_v49  ;;  %813 = vmatpush.bf16.msrb.mxu3 %v805_v50 }
 0x114   : > { %v652_v52 = vsel %vm621_vm0, %v1671_v8, %v612_v51 }
 0x115   : > { %v472_v54 = vpop.f32.mrf.mxu0 }
 0x116   : > { %v549_v55 = vpack.c.bf16 %v472_v54, %v472_v54  ;;  %v521_v56 = vpop.f32.mrf.mxu1  ;;  %814 = vmatpush.bf16.msrb.mxu3 %v652_v52 }
 0x117   : > { %v565_v7 = vpack.c.bf16 %v521_v56, %v521_v56 }
 0x118   : > { %v597_v59 = vunpack.c.l.b16 %v549_v55 }
 0x119   : > { %v821_v60 = vsel %vm621_vm0, %v565_v7, 0  ;;  %1168 = vmatmul.msk.bf16.vlgmr.msrb.gmra.mxu3 %vm688_vm1, %v1710_v53 }
 0x11a   : > { %v613_v42 = vpack.c.b16 %v597_v59, %v597_v59  ;;  %829 = vmatpush.bf16.msra.mxu2 %v821_v60 }
 0x11c   : > { %v656_v61 = vsel %vm621_vm0, %v1677_v14, %v613_v42 }
 0x11d   : > { %v474_v62 = vpop.f32.mrf.mxu0 }
 0x11e   : > { %v550_v63 = vpack.c.bf16 %v474_v62, %v474_v62  ;;  %v523_v2 = vpop.f32.mrf.mxu1  ;;  %830 = vmatpush.bf16.msra.mxu2 %v656_v61 }
 0x11f   : > { %v566_v8 = vpack.c.bf16 %v523_v2, %v523_v2 }
 0x120   : > { %v598_v3 = vunpack.c.l.b16 %v550_v63 }
 0x121   : > { %v837_v4 = vsel %vm621_vm0, %v566_v8, 0  ;;  %1169 = vmatmul.msk.bf16.vlgmr.msra.gmra.mxu2 %vm688_vm1, %v1710_v53 }
 0x122   : > { %v614_v5 = vpack.c.b16 %v598_v3, %v598_v3  ;;  %845 = vmatpush.bf16.msra.mxu3 %v837_v4 }
 0x124   : > { %v660_v6 = vsel %vm621_vm0, %v1679_v15, %v614_v5 }
 0x125   : > { %v477_v9 = vpop.f32.mrf.mxu0 }
 0x126   : > { %v551_v10 = vpack.c.bf16 %v477_v9, %v477_v9  ;;  %v526_v43 = vpop.f32.mrf.mxu1  ;;  %846 = vmatpush.bf16.msra.mxu3 %v660_v6 }
 0x127   : > { %v567_v14 = vpack.c.bf16 %v526_v43, %v526_v43 }
 0x128   : > { %v599_v11 = vunpack.c.l.b16 %v551_v10 }
 0x129   : > { %v853_v12 = vsel %vm621_vm0, %v567_v14, 0  ;;  %1170 = vmatmul.msk.bf16.vlgmr.msra.gmra.mxu3 %vm688_vm1, %v1710_v53 }
 0x12a   : > { %v615_v13 = vpack.c.b16 %v599_v11, %v599_v11  ;;  %861 = vmatpush.bf16.msrb.mxu2 %v853_v12 }
 0x12c   : > { %v664_v16 = vsel %vm621_vm0, %v1685_v21, %v615_v13 }
 0x12d   : > { %v479_v17 = vpop.f32.mrf.mxu0 }
 0x12e   : > { %v552_v18 = vpack.c.bf16 %v479_v17, %v479_v17  ;;  %v528_v19 = vpop.f32.mrf.mxu1  ;;  %862 = vmatpush.bf16.msrb.mxu2 %v664_v16 }
 0x12f   : > { %v568_v15 = vpack.c.bf16 %v528_v19, %v528_v19 }
 0x130   : > { %v600_v57 = vunpack.c.l.b16 %v552_v18 }
 0x131   : > { %v869_v20 = vsel %vm621_vm0, %v568_v15, 0  ;;  %1171 = vmatmul.msk.bf16.vlgmr.msrb.gmra.mxu2 %vm688_vm1, %v1710_v53 }
 0x132   : > { %v616_v23 = vpack.c.b16 %v600_v57, %v600_v57  ;;  %877 = vmatpush.bf16.msrb.mxu3 %v869_v20 }
 0x134   : > { %v668_v24 = vsel %vm621_vm0, %v1687_v22, %v616_v23 }
 0x135   : > { %v482_v25 = vpop.f32.mrf.mxu0 }
 0x136   : > { %v553_v26 = vpack.c.bf16 %v482_v25, %v482_v25  ;;  %v531_v27 = vpop.f32.mrf.mxu1  ;;  %878 = vmatpush.bf16.msrb.mxu3 %v668_v24 }
 0x137   : > { %v569_v21 = vpack.c.bf16 %v531_v27, %v531_v27 }
 0x138   : > { %v601_v30 = vunpack.c.l.b16 %v553_v26 }
 0x139   : > { %v885_v58 = vsel %vm621_vm0, %v569_v21, 0  ;;  %1172 = vmatmul.msk.bf16.vlgmr.msrb.gmra.mxu3 %vm688_vm1, %v1710_v53 }
 0x13a   : > { %v617_v31 = vpack.c.b16 %v601_v30, %v601_v30  ;;  %893 = vmatpush.bf16.msra.mxu2 %v885_v58 }
 0x13c   : > { %v672_v32 = vsel %vm621_vm0, %v1693_v28, %v617_v31 }
 0x13d   : > { %v484_v33 = vpop.f32.mrf.mxu0 }
 0x13e   : > { %v554_v34 = vpack.c.bf16 %v484_v33, %v484_v33  ;;  %v533_v37 = vpop.f32.mrf.mxu1  ;;  %894 = vmatpush.bf16.msra.mxu2 %v672_v32 }
 0x13f   : > { %v570_v22 = vpack.c.bf16 %v533_v37, %v533_v37 }
 0x140   : > { %v602_v38 = vunpack.c.l.b16 %v554_v34 }
 0x141   : > { %v901_v39 = vsel %vm621_vm0, %v570_v22, 0  ;;  %1173 = vmatmul.msk.bf16.vlgmr.msra.gmra.mxu2 %vm688_vm1, %v1710_v53 }
 0x142   : > { %v618_v0 = vpack.c.b16 %v602_v38, %v602_v38  ;;  %909 = vmatpush.bf16.msra.mxu3 %v901_v39 }
 0x144   : > { %v676_v40 = vsel %vm621_vm0, %v1695_v29, %v618_v0 }
 0x145   : > { %v487_v41 = vpop.f32.mrf.mxu0 }
 0x146   : > { %v555_v44 = vpack.c.bf16 %v487_v41, %v487_v41  ;;  %v536_v45 = vpop.f32.mrf.mxu1  ;;  %910 = vmatpush.bf16.msra.mxu3 %v676_v40 }
 0x147   : > { %v571_v28 = vpack.c.bf16 %v536_v45, %v536_v45 }
 0x148   : > { %v603_v46 = vunpack.c.l.b16 %v555_v44 }
 0x149   : > { %v917_v47 = vsel %vm621_vm0, %v571_v28, 0  ;;  %1174 = vmatmul.msk.bf16.vlgmr.msra.gmra.mxu3 %vm688_vm1, %v1710_v53 }
 0x14a   : > { %v619_v48 = vpack.c.b16 %v603_v46, %v603_v46  ;;  %925 = vmatpush.bf16.msrb.mxu2 %v917_v47 }
 0x14c   : > { %v680_v1 = vsel %vm621_vm0, %v1701_v35, %v619_v48  ;;  %v1789_v35 = vld [vmem:[#allocation8] sm:$0xff] }
 0x14d   : > { %v489_v49 = vpop.f32.mrf.mxu0 }
 0x14e   : > { %v556_v50 = vpack.c.bf16 %v489_v49, %v489_v49  ;;  %v538_v29 = vpop.f32.mrf.mxu1  ;;  %926 = vmatpush.bf16.msrb.mxu2 %v680_v1 }
 0x14f   : > { %v572_v51 = vpack.c.bf16 %v538_v29, %v538_v29 }
 0x150   : > { %v604_v52 = vunpack.c.l.b16 %v556_v50 }
 0x151   : > { %v933_v54 = vsel %vm621_vm0, %v572_v51, 0  ;;  %1175 = vmatmul.msk.bf16.vlgmr.msrb.gmra.mxu2 %vm688_vm1, %v1710_v53 }
 0x152   : > { %v620_v55 = vpack.c.b16 %v604_v52, %v604_v52  ;;  %941 = vmatpush.bf16.msrb.mxu3 %v933_v54 }
 0x154   : > { %v684_v56 = vsel %vm621_vm0, %v1703_v36, %v620_v55 }
 0x156   : > { %942 = vmatpush.bf16.msrb.mxu3 %v684_v56 }
 0x159   : > { %1176 = vmatmul.msk.bf16.vlgmr.msrb.gmra.mxu3 %vm688_vm1, %v1710_v53 }
 0x164   : > { %v704_v7 = vpop.f32.mrf.mxu2 }
 0x165   : > { %v705_v59 = vadd.f32 %v704_v7, %v1789_v35 }
 0x167   : > { %948 = vst [vmem:[%s1794_s21] sm:$0xff] %v705_v59 }
 0x16c   : > { %v720_v60 = vpop.f32.mrf.mxu3  ;;  %v706_v36 = vpop.f32.mrf.mxu2 }
 0x16d   : > { %v721_v42 = vadd.f32 %v720_v60, %v1789_v35 }
 0x16f   : > { %949 = vst [vmem:[%s1794_s21 + $0x8] sm:$0xff] %v721_v42 }
 0x174   : > { %v722_v53 = vpop.f32.mrf.mxu3  ;;  %v736_v61 = vpop.f32.mrf.mxu2 }
 0x175   : > { %v737_v62 = vadd.f32 %v736_v61, %v1789_v35 }
 0x177   : > { %950 = vst [vmem:[%s1794_s21 + $0x10] sm:$0xff] %v737_v62 }
 0x17c   : > { %v752_v63 = vpop.f32.mrf.mxu3  ;;  %v738_v2 = vpop.f32.mrf.mxu2 }
 0x17d   : > { %v753_v8 = vadd.f32 %v752_v63, %v1789_v35 }
 0x17f   : > { %951 = vst [vmem:[%s1794_s21 + $0x18] sm:$0xff] %v753_v8 }
 0x184   : > { %v754_v3 = vpop.f32.mrf.mxu3  ;;  %v768_v4 = vpop.f32.mrf.mxu2 }
 0x185   : > { %v769_v5 = vadd.f32 %v768_v4, %v1789_v35 }
 0x187   : > { %952 = vst [vmem:[%s1794_s21 + $0x20] sm:$0xff] %v769_v5 }
 0x18c   : > { %v784_v6 = vpop.f32.mrf.mxu3  ;;  %v770_v9 = vpop.f32.mrf.mxu2 }
 0x18d   : > { %v785_v10 = vadd.f32 %v784_v6, %v1789_v35 }
 0x18f   : > { %953 = vst [vmem:[%s1794_s21 + $0x28] sm:$0xff] %v785_v10 }
 0x194   : > { %v786_v43 = vpop.f32.mrf.mxu3  ;;  %v800_v14 = vpop.f32.mrf.mxu2 }
 0x195   : > { %v801_v11 = vadd.f32 %v800_v14, %v1789_v35 }
 0x197   : > { %954 = vst [vmem:[%s1794_s21 + $0x30] sm:$0xff] %v801_v11 }
 0x19c   : > { %v816_v12 = vpop.f32.mrf.mxu3  ;;  %v802_v13 = vpop.f32.mrf.mxu2 }
 0x19d   : > { %v817_v16 = vadd.f32 %v816_v12, %v1789_v35 }
 0x19f   : > { %955 = vst [vmem:[%s1794_s21 + $0x38] sm:$0xff] %v817_v16 }
 0x1a4   : > { %v818_v17 = vpop.f32.mrf.mxu3  ;;  %v832_v18 = vpop.f32.mrf.mxu2 }
 0x1a5   : > { %v833_v19 = vadd.f32 %v832_v18, %v1789_v35 }
 0x1a7   : > { %956 = vst [vmem:[%s1794_s21 + $0x40] sm:$0xff] %v833_v19 }
 0x1ac   : > { %v848_v15 = vpop.f32.mrf.mxu3  ;;  %v834_v57 = vpop.f32.mrf.mxu2 }
 0x1ad   : > { %v849_v20 = vadd.f32 %v848_v15, %v1789_v35 }
 0x1af   : > { %957 = vst [vmem:[%s1794_s21 + $0x48] sm:$0xff] %v849_v20 }
 0x1b4   : > { %v850_v23 = vpop.f32.mrf.mxu3  ;;  %v864_v24 = vpop.f32.mrf.mxu2 }
 0x1b5   : > { %v865_v25 = vadd.f32 %v864_v24, %v1789_v35 }
 0x1b7   : > { %958 = vst [vmem:[%s1794_s21 + $0x50] sm:$0xff] %v865_v25 }
 0x1bc   : > { %v880_v26 = vpop.f32.mrf.mxu3  ;;  %v866_v27 = vpop.f32.mrf.mxu2 }
 0x1bd   : > { %v881_v21 = vadd.f32 %v880_v26, %v1789_v35 }
 0x1bf   : > { %959 = vst [vmem:[%s1794_s21 + $0x58] sm:$0xff] %v881_v21 }
 0x1c4   : > { %v882_v30 = vpop.f32.mrf.mxu3  ;;  %v896_v58 = vpop.f32.mrf.mxu2 }
 0x1c5   : > { %v897_v31 = vadd.f32 %v896_v58, %v1789_v35 }
 0x1c7   : > { %960 = vst [vmem:[%s1794_s21 + $0x60] sm:$0xff] %v897_v31 }
 0x1cc   : > { %v912_v32 = vpop.f32.mrf.mxu3  ;;  %v898_v33 = vpop.f32.mrf.mxu2 }
 0x1cd   : > { %v913_v34 = vadd.f32 %v912_v32, %v1789_v35 }
 0x1cf   : > { %961 = vst [vmem:[%s1794_s21 + $0x68] sm:$0xff] %v913_v34 }
 0x1d4   : > { %v914_v37 = vpop.f32.mrf.mxu3  ;;  %v928_v22 = vpop.f32.mrf.mxu2 }
 0x1d5   : > { %v929_v38 = vadd.f32 %v928_v22, %v1789_v35 }
 0x1d7   : > { %962 = vst [vmem:[%s1794_s21 + $0x70] sm:$0xff] %v929_v38 }
 0x1dc   : > { %v944_v39 = vpop.f32.mrf.mxu3  ;;  %v930_v0 = vpop.f32.mrf.mxu2 }
 0x1dd   : > { %v945_v40 = vadd.f32 %v944_v39, %v1789_v35 }
 0x1df   : > { %963 = vst [vmem:[%s1794_s21 + $0x78] sm:$0xff] %v945_v40 }
 0x1e0   : > { %1428 = shalt.err (!%p1425_p10)
}
 0x1e1   : > { %s1482_s30 = smov 128   ;;  %s1483_s24 = smov 8  }
 0x1e2   : > { %1214 = dma.vmem_to_hbm [thread:$0]  (%p1593_p0), %s978_s13, 2048, %s980_s14, %s965_s19, %s1482_s30, %s1482_s30, %s1483_s24  }
 0x1e4   : > { %v946_v41 = vpop.f32.mrf.mxu3 }
 0x1e5 PF: > { %p1241_p11 = scmp.ge.s32.totalorder %s1475_s18, 2  ;;  %s994_s25 = sand.u32 1, %s1463_s15  }
 0x1e6   : > { %s995_s21 = scalar_lea.sflag [#allocation4], %s994_s25 }
 0x1e7   : > { %p1231_p12 = pnand %p1241_p11, %p1544_p6 }
 0x1e9   : > { %p1232_p13 = pneg %p1231_p12 }
 0x1eb   : > { %1458 = dma.done.wait (%p1232_p13), %s995_s21, 2048  }
 0x1ec   : > { %1460 = vsyncadd (%p1232_p13), %s995_s21, 4294965248  ;;  %p19_p3 = scmp.ge.s32.totalorder %s1578_s23, 6   ;;  %s1871_s15 = smov %s1467_s16 }
 0x1ed   : > { %s1872_s16 = smov %s1471_s17  ;;  %s1873_s17 = smov %s1589_s27 }
 0x1ee   : > { %s1874_s18 = smov %s1578_s23  ;;  %21 = sbr.rel (!%p19_p3) target bundleno = 7 (0x7), region = 93 }
 0x1f3   :  { %1001 = vsyncpa [#allocation3], 1 }
 0x1f4   :  { %1003 = vsyncpa [#allocation3 + $0x1], 1 }
 0x1f5   :  { %1004 = vsyncpa [#allocation6], 1 }
 0x1f6   :  { %1005 = vsyncpa [#allocation9], 1 }
 0x1f7   :  { %1006 = vsyncpa [#allocation4], 1 }
 0x1f8   :  { %1008 = vsyncpa [#allocation4 + $0x1], 1 }

// kernel: tpu_custom_call.1
= control target key start
LH: loop header
LB: loop body
LE: loop exit
PB: predicated region body
PF: predicated region fallthrough
CT: control target
= control target key end

     0   :  { %9 = vsyncpa [#allocation3], 0  ;;  %s1860_s0 = inlined_call_operand.hbm [shape: f32[512,128], index: 0, kind: input, shape index: {}]   ;;  %s1861_s1 = inlined_call_operand.hbm [shape: bf16[128,256], index: 1, kind: input, shape index: {}]   ;;  %s1862_s2 = inlined_call_operand.hbm [shape: bf16[8,24], index: 2, kind: input, shape index: {}]   ;;  %s1863_s3 = inlined_call_operand.hbm [shape: f32[8,128], index: 3, kind: input, shape index: {}]   ;;  %s1864_s4 = inlined_call_operand.hbm [shape: f32[64,8,128], index: 4, kind: output, shape index: {}]  }
   0x1   :  { %11 = vsyncpa [#allocation3 + $0x1], 0 }
   0x2   :  { %12 = vsyncpa [#allocation6], 0 }
   0x3   :  { %13 = vsyncpa [#allocation9], 0 }
   0x4   :  { %14 = vsyncpa [#allocation4], 0 }
   0x5   :  { %16 = vsyncpa [#allocation4 + $0x1], 0  ;;  %s1509_s15 = smov 0   ;;  %s1511_s16 = smov 0  }
   0x6   :  { %s1513_s17 = smov 0   ;;  %s1515_s18 = smov 0  }
   0x7 LB: > { %s1530_s19 = sadd.s32 4294967295, %s1475_s18   ;;  %s1082_s20 = sadd.s32 4294967294, %s1475_s18   ;;  %s1475_s18 = sphi %s1515_s18, %s1874_s18   ;;  %s1471_s17 = sphi %s1513_s17, %s1873_s17   ;;  %s1467_s16 = sphi %s1511_s16, %s1872_s16   ;;  %s1463_s15 = sphi %s1509_s15, %s1871_s15  }
   0x8   : > { %p42_p0 = scmp.ne.s32.totalorder %s1467_s16, %s1463_s15  ;;  %p43_p1 = scmp.eq.s32.totalorder %s1530_s19, 0 }
   0x9   : > { %p129_p2 = scmp.eq.s32.totalorder %s1530_s19, 3  ;;  %p135_p3 = scmp.eq.s32.totalorder %s1082_s20, 3 }
   0xa   : > { %p1539_p4 = por %p43_p1, %p42_p0  ;;  %p1083_p5 = scmp.ge.s32.totalorder %s1475_s18, 1 }
   0xb   : > { %p1544_p6 = por %p135_p3, %p42_p0  ;;  %p142_p7 = scmp.lt.s32.totalorder %s1475_s18, 5 }
   0xc   : > { %s153_s25 = sshll.u32 %s1861_s1, 4  ;;  %s1477_s27 = smov [#allocation5]   ;;  %s154_s25 = int_to_ptr.hbm [resolvable:$true] %s153_s25 }
   0xd   : > { %p1552_p8 = pnand %p1083_p5, %p142_p7  ;;  %s155_s28 = sshll.u32 %s1477_s27, 4  ;;  %s156_s28 = int_to_ptr.vmem [resolvable:$true] %s155_s28 }
   0xe   : > { %s168_s6 = sshll.u32 %s1862_s2, 4  ;;  %s1478_s7 = smov 128   ;;  %s169_s6 = int_to_ptr.hbm [resolvable:$true] %s168_s6 }
   0xf   : > { %p1216_p9 = pneg %p1552_p8  ;;  %s1479_s8 = smov 8  }
  0x10   : > { %s1480_s9 = smov [#allocation7]   ;;  %s180_s13 = sshll.u32 %s1863_s3, 4  ;;  %s181_s13 = int_to_ptr.hbm [resolvable:$true] %s180_s13 }
  0x11   : > { %p1560_p10 = pnand %p1216_p9, %p43_p1  ;;  %s170_s10 = sshll.u32 %s1480_s9, 4  ;;  %s171_s10 = int_to_ptr.vmem [resolvable:$true] %s170_s10 }
  0x12   : > { %s1481_s14 = smov [#allocation8]   ;;  %s1578_s23 = sadd.s32 1, %s1475_s18  }
  0x13   : > { %1219 = dma.hbm_to_vmem [thread:$0]  (!%p1560_p10), %s154_s25, 2048, %s156_s28, [#allocation6], %s1478_s7, %s1478_s7, %s1479_s8  }
  0x14   : > { %1222 = dma.hbm_to_vmem [thread:$0]  (!%p1560_p10), %s169_s6, 64, %s171_s10, [#allocation6]  }
  0x15   : > { %s182_s20 = sshll.u32 %s1481_s14, 4  ;;  %s26_s24 = ssub.s32 %s1475_s18, %s1578_s23  ;;  %s183_s20 = int_to_ptr.vmem [resolvable:$true] %s182_s20 }
  0x16   : > { %1225 = dma.hbm_to_vmem [thread:$0]  (!%p1560_p10), %s181_s13, 128, %s183_s20, [#allocation9]  }
  0x17   : > { %s29_s25 = sadd.s32 1, %s1471_s17  ;;  %p27_p11 = scmp.eq.s32.totalorder %s26_s24, 0 }
  0x18   : > { %p36_p12 = scmp.ne.s32.totalorder %s1471_s17, %s1467_s16  ;;  %p37_p13 = scmp.eq.s32.totalorder %s1475_s18, 0 }
  0x19   : > { %s1589_s27 = scalar_select %p27_p11, %s1471_s17, %s29_s25  }
  0x1a   : > { %p1593_p0 = por %p129_p2, %p36_p12  ;;  %p1237_p3 = scmp.lt.s32.totalorder %s1475_s18, 4 }
  0x1b   : > { %s193_s30 = sand.u32 1, %s1471_s17   ;;  %s1182_s5 = sshll.u32 %s1475_s18, 7 }
  0x1c   : > { %p38_p5 = por %p37_p13, %p36_p12  ;;  %s1088_s6 = sshll.u32 %s193_s30, 7 }
  0x1d   : > { %s202_s10 = scalar_lea.hbm %s1860_s0, %s1182_s5  ;;  %s197_s12 = scalar_lea.vmem [#allocation2], %s1088_s6 }
  0x1e   : > { %s203_s11 = sshll.u32 %s202_s10, 4  ;;  %s205_s13 = sshll.u32 %s197_s12, 4  ;;  %s204_s11 = int_to_ptr.hbm [resolvable:$true] %s203_s11  ;;  %s206_s13 = int_to_ptr.vmem [resolvable:$true] %s205_s13 }
  0x1f   : > { %p1603_p7 = pnand %p1237_p3, %p38_p5  ;;  %s194_s20 = scalar_lea.sflag [#allocation3], %s193_s30 }
  0x20   : > { %s1371_s24 = sshra.s32 %s204_s11, 4  ;;  %s1378_s6 = scalar_lea.hbm %s1860_s0, 512  ;;  %s1372_s24 = int_to_ptr.hbm [resolvable:$true] %s1371_s24 }
  0x21   : > { %s1373_s25 = scalar_lea.hbm %s1372_s24, 128  ;;  %p1375_p9 = pneg %p1603_p7 }
  0x22   : > { %p1374_p2 = scmp.ne.s32.totalorder %s1372_s24, %s1373_s25  ;;  %p1379_p12 = scmp.lt.s32.totalorder %s1372_s24, %s1860_s0 }
  0x23   : > { %p1380_p13 = scmp.lt.s32.totalorder %s1378_s6, %s1373_s25 }
  0x24   : > { %p1376_p10 = pnand %p1375_p9, %p1374_p2 }
  0x25   : > { %p1381_p3 = por %p1380_p13, %p1379_p12 }
  0x26   : > { %p1377_p11 = pneg %p1376_p10 }
  0x28   : > { %p1382_p5 = pnand %p1381_p3, %p1377_p11 }
  0x2a   : > { %1385 = shalt.err (!%p1382_p5)
}
  0x2b   : > { %1229 = dma.hbm_to_vmem [thread:$0]  (!%p1603_p7), %s204_s11, 2048, %s206_s13, %s194_s20, %s1478_s7, %s1478_s7, %s1479_s8  }
  0x2c   : > { %217 = sbr.rel (%p1552_p8) target bundleno = 485 (0x1e5), region = 36  ;;  %s1623_s30 = sand.u32 (!%p1552_p8), 1, %s1467_s16  }
  0x2d   : > { %s1092_s12 = sshll.u32 (!%p1552_p8), %s1623_s30, 7  ;;  %s220_s24 = scalar_lea.sflag (!%p1552_p8), [#allocation3], %s1623_s30 }
  0x2e   : > { %s1629_s25 = scalar_lea.vmem (!%p1552_p8), [#allocation2], %s1092_s12 }
  0x31   : > { %1446 = dma.done.wait (%p1539_p4), %s220_s24, 2048  }
  0x32   : > { %1448 = vsyncadd (%p1539_p4), %s220_s24, 4294965248 }
  0x33   : > { %1450 = dma.done.wait (%p43_p1), [#allocation6], 2112  }
  0x34   : > { %1452 = vsyncadd (%p43_p1), [#allocation6], 4294965184 }
  0x35   : > { %1454 = dma.done.wait (%p43_p1), [#allocation9], 128  }
  0x36   : > { %1456 = vsyncadd (%p43_p1), [#allocation9], 4294967168  ;;  %v1155_v0 = vld [vmem:[#allocation5 + $0x70] sm:$0xf]  ;;  %v1198_v1 = vld [vmem:[#allocation5 + $0x74] sm:$0xf0] }
  0x37   : > { %v1197_v2 = vld [vmem:[#allocation5 + $0x74] sm:$0xf]  ;;  %v1156_v3 = vor.u32 %v1198_v1, %v1155_v0  ;;  %v1157_v4 = vld [vmem:[#allocation5 + $0x78] sm:$0xf0]  ;;  %v1147_v5 = vld [vmem:[#allocation5 + $0x60] sm:$0xf] }
  0x38   : > { %v1196_v6 = vld [vmem:[#allocation5 + $0x64] sm:$0xf0]  ;;  %v1160_v7 = vor.u32 %v1197_v2, %v1157_v4  ;;  %v1195_v8 = vld [vmem:[#allocation5 + $0x64] sm:$0xf]  ;;  %v1149_v9 = vld [vmem:[#allocation5 + $0x68] sm:$0xf0] }
  0x39   : > { %443 = vmatpush.bf16.msra.mxu0 %v1156_v3  ;;  %v1148_v10 = vor.u32 %v1196_v6, %v1147_v5  ;;  %v1152_v11 = vor.u32 %v1195_v8, %v1149_v9  ;;  %v1139_v12 = vld [vmem:[#allocation5 + $0x50] sm:$0xf]  ;;  %v1194_v13 = vld [vmem:[#allocation5 + $0x54] sm:$0xf0]  ;;  %v1193_v14 = vld [vmem:[#allocation5 + $0x54] sm:$0xf] }
  0x3a   : > { %492 = vmatpush.bf16.msra.mxu1 %v1160_v7  ;;  %v1141_v15 = vld [vmem:[#allocation5 + $0x58] sm:$0xf0]  ;;  %v1140_v16 = vor.u32 %v1194_v13, %v1139_v12  ;;  %v1131_v18 = vld [vmem:[#allocation5 + $0x40] sm:$0xf]  ;;  %v1192_v19 = vld [vmem:[#allocation5 + $0x44] sm:$0xf0] }
  0x3b   : > { %v1144_v17 = vor.u32 %v1193_v14, %v1141_v15  ;;  %v1191_v20 = vld [vmem:[#allocation5 + $0x44] sm:$0xf]  ;;  %v1133_v21 = vld [vmem:[#allocation5 + $0x48] sm:$0xf0]  ;;  %v1132_v22 = vor.u32 %v1192_v19, %v1131_v18  ;;  %v1123_v24 = vld [vmem:[#allocation5 + $0x30] sm:$0xf] }
  0x3c   : > { %v1136_v23 = vor.u32 %v1191_v20, %v1133_v21  ;;  %v1190_v25 = vld [vmem:[#allocation5 + $0x34] sm:$0xf0]  ;;  %v1189_v26 = vld [vmem:[#allocation5 + $0x34] sm:$0xf]  ;;  %v1125_v27 = vld [vmem:[#allocation5 + $0x38] sm:$0xf0] }
  0x3d   : > { %444 = vmatpush.bf16.msra.mxu0 %v1148_v10  ;;  %v1124_v28 = vor.u32 %v1190_v25, %v1123_v24  ;;  %v1128_v29 = vor.u32 %v1189_v26, %v1125_v27  ;;  %v1115_v30 = vld [vmem:[#allocation5 + $0x20] sm:$0xf]  ;;  %v1188_v31 = vld [vmem:[#allocation5 + $0x24] sm:$0xf0]  ;;  %v1187_v32 = vld [vmem:[#allocation5 + $0x24] sm:$0xf] }
  0x3e   : > { %493 = vmatpush.bf16.msra.mxu1 %v1152_v11  ;;  %v1117_v33 = vld [vmem:[#allocation5 + $0x28] sm:$0xf0]  ;;  %v1116_v34 = vor.u32 %v1188_v31, %v1115_v30  ;;  %v267_v35 = vld [vmem:[%s1629_s25] sm:$0xff]  ;;  %v1107_v38 = vld [vmem:[#allocation5 + $0x10] sm:$0xf]  ;;  %vm621_vm0 = vcmask 1043456  }
  0x3f   : > { %v268_v36 = vld [vmem:[%s1629_s25 + $0x8] sm:$0xff]  ;;  %v1120_v37 = vor.u32 %v1187_v32, %v1117_v33  ;;  %v1186_v39 = vld [vmem:[#allocation5 + $0x14] sm:$0xf0]  ;;  %v1185_v40 = vld [vmem:[#allocation5 + $0x14] sm:$0xf]  ;;  %v1645_v42 = vpack.c.bf16 %v267_v35, %v267_v35  ;;  %vm688_vm1 = vcmask 195584  }
  0x40   : > { %v1109_v41 = vld [vmem:[#allocation5 + $0x18] sm:$0xf0]  ;;  %v1647_v43 = vpack.c.bf16 %v268_v36, %v268_v36  ;;  %v1108_v44 = vor.u32 %v1186_v39, %v1107_v38  ;;  %v1099_v46 = vld [vmem:[#allocation5] sm:$0xf]  ;;  %v1184_v47 = vld [vmem:[#allocation5 + $0x4] sm:$0xf0] }
  0x41   : > { %445 = vmatpush.bf16.msra.mxu0 %v1140_v16  ;;  %v1112_v45 = vor.u32 %v1185_v40, %v1109_v41  ;;  %v1183_v48 = vld [vmem:[#allocation5 + $0x4] sm:$0xf]  ;;  %v1101_v49 = vld [vmem:[#allocation5 + $0x8] sm:$0xf0]  ;;  %v331_v50 = vunpack.c.l.b16 %v1645_v42  ;;  %v1100_v52 = vor.u32 %v1184_v47, %v1099_v46  ;;  %v269_v55 = vld [vmem:[%s1629_s25 + $0x10] sm:$0xff]  ;;  %s1794_s21 = scalar_lea.vmem [#allocation10], %s1092_s12 }
  0x42   : > { %494 = vmatpush.bf16.msra.mxu1 %v1144_v17  ;;  %v332_v51 = vunpack.c.l.b16 %v1647_v43  ;;  %v1104_v53 = vor.u32 %v1183_v48, %v1101_v49  ;;  %v270_v56 = vld [vmem:[%s1629_s25 + $0x18] sm:$0xff]  ;;  %v1653_v57 = vpack.c.bf16 %v269_v55, %v269_v55  ;;  %v271_v62 = vld [vmem:[%s1629_s25 + $0x20] sm:$0xff]  ;;  %v272_v63 = vld [vmem:[%s1629_s25 + $0x28] sm:$0xff]  ;;  %s1199_s26 = sshll.u32 %s1530_s19, 7  ;;  %s977_s13 = sshll.u32 %s1794_s21, 4  ;;  %s978_s13 = int_to_ptr.vmem [resolvable:$true] %s977_s13 }
  0x43   : > { %v1655_v58 = vpack.c.bf16 %v270_v56, %v270_v56  ;;  %v1661_v0 = vpack.c.bf16 %v271_v62, %v271_v62  ;;  %v1663_v1 = vpack.c.bf16 %v272_v63, %v272_v63  ;;  %v273_v5 = vld [vmem:[%s1629_s25 + $0x30] sm:$0xff]  ;;  %v274_v6 = vld [vmem:[%s1629_s25 + $0x38] sm:$0xff]  ;;  %v275_v12 = vld [vmem:[%s1629_s25 + $0x40] sm:$0xff]  ;;  %s976_s11 = scalar_lea.hbm %s1864_s4, %s1199_s26  ;;  %s965_s19 = scalar_lea.sflag [#allocation4], %s1623_s30 }
  0x44   : > { %v347_v54 = vpack.c.b16 %v332_v51, %v331_v50  ;;  %v333_v59 = vunpack.c.l.b16 %v1653_v57  ;;  %v1669_v7 = vpack.c.bf16 %v273_v5, %v273_v5  ;;  %v1671_v8 = vpack.c.bf16 %v274_v6, %v274_v6  ;;  %v276_v13 = vld [vmem:[%s1629_s25 + $0x48] sm:$0xff]  ;;  %v277_v19 = vld [vmem:[%s1629_s25 + $0x50] sm:$0xff]  ;;  %v278_v20 = vld [vmem:[%s1629_s25 + $0x58] sm:$0xff]  ;;  %s979_s14 = sshll.u32 %s976_s11, 4  ;;  %s1421_s9 = scalar_lea.hbm %s1864_s4, 512  ;;  %s980_s14 = int_to_ptr.hbm [resolvable:$true] %s979_s14 }
  0x45   : > { %446 = vmatpush.bf16.msra.mxu0 %v1132_v22  ;;  %v334_v60 = vunpack.c.l.b16 %v1655_v58  ;;  %v335_v2 = vunpack.c.l.b16 %v1661_v0  ;;  %v336_v3 = vunpack.c.l.b16 %v1663_v1  ;;  %v1677_v14 = vpack.c.bf16 %v275_v12, %v275_v12  ;;  %v279_v26 = vld [vmem:[%s1629_s25 + $0x60] sm:$0xff]  ;;  %v280_v27 = vld [vmem:[%s1629_s25 + $0x68] sm:$0xff]  ;;  %v281_v33 = vld [vmem:[%s1629_s25 + $0x70] sm:$0xff]  ;;  %s1415_s20 = sshra.s32 %s980_s14, 4  ;;  %s1416_s20 = int_to_ptr.hbm [resolvable:$true] %s1415_s20 }
  0x46   : > { %495 = vmatpush.bf16.msra.mxu1 %v1136_v23  ;;  %v337_v9 = vunpack.c.l.b16 %v1669_v7  ;;  %v338_v10 = vunpack.c.l.b16 %v1671_v8  ;;  %v1679_v15 = vpack.c.bf16 %v276_v13, %v276_v13  ;;  %v1685_v21 = vpack.c.bf16 %v277_v19, %v277_v19  ;;  %s1417_s5 = scalar_lea.hbm %s1416_s20, 128  ;;  %p1422_p7 = scmp.lt.s32.totalorder %s1416_s20, %s1864_s4 }
  0x47   : > { %v348_v61 = vpack.c.b16 %v334_v60, %v333_v59  ;;  %v349_v4 = vpack.c.b16 %v336_v3, %v335_v2  ;;  %v339_v16 = vunpack.c.l.b16 %v1677_v14  ;;  %v1687_v22 = vpack.c.bf16 %v278_v20, %v278_v20  ;;  %p1418_p1 = scmp.ne.s32.totalorder %s1416_s20, %s1417_s5  ;;  %p1423_p2 = scmp.lt.s32.totalorder %s1421_s9, %s1417_s5 }
  0x48   : > { %v350_v11 = vpack.c.b16 %v338_v10, %v337_v9  ;;  %v340_v17 = vunpack.c.l.b16 %v1679_v15  ;;  %v341_v23 = vunpack.c.l.b16 %v1685_v21  ;;  %v1701_v35 = vpack.c.bf16 %v281_v33, %v281_v33 }
  0x49   : > { %447 = vmatpush.bf16.msra.mxu0 %v1124_v28  ;;  %v342_v24 = vunpack.c.l.b16 %v1687_v22  ;;  %v1693_v28 = vpack.c.bf16 %v279_v26, %v279_v26  ;;  %p1419_p4 = pnand %p1418_p1, %p1593_p0  ;;  %p1424_p9 = por %p1423_p2, %p1422_p7 }
  0x4a   : > { %496 = vmatpush.bf16.msra.mxu1 %v1128_v29  ;;  %v351_v18 = vpack.c.b16 %v340_v17, %v339_v16  ;;  %v1695_v29 = vpack.c.bf16 %v280_v27, %v280_v27 }
  0x4b   : > { %v352_v25 = vpack.c.b16 %v342_v24, %v341_v23  ;;  %v343_v30 = vunpack.c.l.b16 %v1693_v28  ;;  %p1420_p8 = pneg %p1419_p4 }
  0x4c   : > { %v344_v31 = vunpack.c.l.b16 %v1695_v29 }
  0x4d   : > { %448 = vmatpush.bf16.msra.mxu0 %v1116_v34  ;;  %v282_v34 = vld [vmem:[%s1629_s25 + $0x78] sm:$0xff]  ;;  %p1425_p10 = pnand %p1424_p9, %p1420_p8 }
  0x4e   : > { %497 = vmatpush.bf16.msra.mxu1 %v1120_v37  ;;  %v353_v32 = vpack.c.b16 %v344_v31, %v343_v30  ;;  %v1703_v36 = vpack.c.bf16 %v282_v34, %v282_v34  ;;  %v345_v37 = vunpack.c.l.b16 %v1701_v35 }
  0x50   : > { %v346_v38 = vunpack.c.l.b16 %v1703_v36 }
  0x51   : > { %449 = vmatpush.bf16.msra.mxu0 %v1108_v44 }
  0x52   : > { %498 = vmatpush.bf16.msra.mxu1 %v1112_v45  ;;  %v354_v39 = vpack.c.b16 %v346_v38, %v345_v37 }
  0x55   : > { %450 = vmatpush.bf16.msra.mxu0 %v1100_v52 }
  0x56   : > { %499 = vmatpush.bf16.msra.mxu1 %v1104_v53  ;;  %v1710_v53 = vld [vmem:[#allocation7] sm:$0xf] }
  0x58   : > { %451 = vmatmul.bf16.vlgmr.msra.gmra.mxu0 %v347_v54 }
  0x59   : > { %500 = vmatmul.bf16.vlgmr.msra.gmra.mxu1 %v347_v54 }
  0x68   : > { %456 = vmatmul.bf16.gmra.mxu0 %v348_v61 }
  0x69   : > { %505 = vmatmul.bf16.gmra.mxu1 %v348_v61 }
  0x78   : > { %461 = vmatmul.bf16.gmra.mxu0 %v349_v4 }
  0x79   : > { %510 = vmatmul.bf16.gmra.mxu1 %v349_v4 }
  0x88   : > { %466 = vmatmul.bf16.gmra.mxu0 %v350_v11 }
  0x89   : > { %515 = vmatmul.bf16.gmra.mxu1 %v350_v11 }
  0x98   : > { %471 = vmatmul.bf16.gmra.mxu0 %v351_v18 }
  0x99   : > { %520 = vmatmul.bf16.gmra.mxu1 %v351_v18 }
  0xa8   : > { %476 = vmatmul.bf16.gmra.mxu0 %v352_v25 }
  0xa9   : > { %525 = vmatmul.bf16.gmra.mxu1 %v352_v25 }
  0xb8   : > { %481 = vmatmul.bf16.gmra.mxu0 %v353_v32 }
  0xb9   : > { %530 = vmatmul.bf16.gmra.mxu1 %v353_v32 }
  0xc8   : > { %486 = vmatmul.bf16.gmra.mxu0 %v354_v39 }
  0xc9   : > { %535 = vmatmul.bf16.gmra.mxu1 %v354_v39 }
  0xd5   : > { %v452_v40 = vpop.f32.mrf.mxu0 }
  0xd6   : > { %v541_v41 = vpack.c.bf16 %v452_v40, %v452_v40  ;;  %v501_v44 = vpop.f32.mrf.mxu1 }
  0xd7   : > { %v557_v45 = vpack.c.bf16 %v501_v44, %v501_v44 }
  0xd8   : > { %v589_v46 = vunpack.c.l.b16 %v541_v41 }
  0xd9   : > { %v693_v47 = vsel %vm621_vm0, %v557_v45, 0 }
  0xda   : > { %v605_v48 = vpack.c.b16 %v589_v46, %v589_v46  ;;  %701 = vmatpush.bf16.msra.mxu2 %v693_v47 }
  0xdc   : > { %v624_v49 = vsel %vm621_vm0, %v1645_v42, %v605_v48 }
  0xdd   : > { %v454_v50 = vpop.f32.mrf.mxu0 }
  0xde   : > { %v542_v51 = vpack.c.bf16 %v454_v50, %v454_v50  ;;  %v503_v52 = vpop.f32.mrf.mxu1  ;;  %702 = vmatpush.bf16.msra.mxu2 %v624_v49 }
  0xdf   : > { %v558_v54 = vpack.c.bf16 %v503_v52, %v503_v52 }
  0xe0   : > { %v590_v55 = vunpack.c.l.b16 %v542_v51 }
  0xe1   : > { %v709_v56 = vsel %vm621_vm0, %v558_v54, 0  ;;  %1161 = vmatmul.msk.bf16.vlgmr.msra.gmra.mxu2 %vm688_vm1, %v1710_v53 }
  0xe2   : > { %v606_v59 = vpack.c.b16 %v590_v55, %v590_v55  ;;  %717 = vmatpush.bf16.msra.mxu3 %v709_v56 }
  0xe4   : > { %v628_v60 = vsel %vm621_vm0, %v1647_v43, %v606_v59 }
  0xe5   : > { %v457_v42 = vpop.f32.mrf.mxu0 }
  0xe6   : > { %v543_v61 = vpack.c.bf16 %v457_v42, %v457_v42  ;;  %v506_v62 = vpop.f32.mrf.mxu1  ;;  %718 = vmatpush.bf16.msra.mxu3 %v628_v60 }
  0xe7   : > { %v559_v63 = vpack.c.bf16 %v506_v62, %v506_v62 }
  0xe8   : > { %v591_v2 = vunpack.c.l.b16 %v543_v61 }
  0xe9   : > { %1162 = vmatmul.msk.bf16.vlgmr.msra.gmra.mxu3 %vm688_vm1, %v1710_v53  ;;  %v725_v3 = vsel %vm621_vm0, %v559_v63, 0 }
  0xea   : > { %v607_v4 = vpack.c.b16 %v591_v2, %v591_v2  ;;  %733 = vmatpush.bf16.msrb.mxu2 %v725_v3 }
  0xec   : > { %v632_v5 = vsel %vm621_vm0, %v1653_v57, %v607_v4 }
  0xed   : > { %v459_v6 = vpop.f32.mrf.mxu0 }
  0xee   : > { %v544_v9 = vpack.c.bf16 %v459_v6, %v459_v6  ;;  %v508_v10 = vpop.f32.mrf.mxu1  ;;  %734 = vmatpush.bf16.msrb.mxu2 %v632_v5 }
  0xef   : > { %v560_v43 = vpack.c.bf16 %v508_v10, %v508_v10 }
  0xf0   : > { %v592_v11 = vunpack.c.l.b16 %v544_v9 }
  0xf1   : > { %v741_v12 = vsel %vm621_vm0, %v560_v43, 0  ;;  %1163 = vmatmul.msk.bf16.vlgmr.msrb.gmra.mxu2 %vm688_vm1, %v1710_v53 }
  0xf2   : > { %v608_v13 = vpack.c.b16 %v592_v11, %v592_v11  ;;  %749 = vmatpush.bf16.msrb.mxu3 %v741_v12 }
  0xf4   : > { %v636_v16 = vsel %vm621_vm0, %v1655_v58, %v608_v13 }
  0xf5   : > { %v462_v17 = vpop.f32.mrf.mxu0 }
  0xf6   : > { %v545_v18 = vpack.c.bf16 %v462_v17, %v462_v17  ;;  %v511_v19 = vpop.f32.mrf.mxu1  ;;  %750 = vmatpush.bf16.msrb.mxu3 %v636_v16 }
  0xf7   : > { %v561_v57 = vpack.c.bf16 %v511_v19, %v511_v19 }
  0xf8   : > { %v593_v20 = vunpack.c.l.b16 %v545_v18 }
  0xf9   : > { %v757_v23 = vsel %vm621_vm0, %v561_v57, 0  ;;  %1164 = vmatmul.msk.bf16.vlgmr.msrb.gmra.mxu3 %vm688_vm1, %v1710_v53 }
  0xfa   : > { %v609_v24 = vpack.c.b16 %v593_v20, %v593_v20  ;;  %765 = vmatpush.bf16.msra.mxu2 %v757_v23 }
  0xfc   : > { %v640_v25 = vsel %vm621_vm0, %v1661_v0, %v609_v24 }
  0xfd   : > { %v464_v26 = vpop.f32.mrf.mxu0 }
  0xfe   : > { %v546_v27 = vpack.c.bf16 %v464_v26, %v464_v26  ;;  %v513_v30 = vpop.f32.mrf.mxu1  ;;  %766 = vmatpush.bf16.msra.mxu2 %v640_v25 }
  0xff   : > { %v562_v58 = vpack.c.bf16 %v513_v30, %v513_v30 }
 0x100   : > { %v594_v31 = vunpack.c.l.b16 %v546_v27 }
 0x101   : > { %v773_v32 = vsel %vm621_vm0, %v562_v58, 0  ;;  %1165 = vmatmul.msk.bf16.vlgmr.msra.gmra.mxu2 %vm688_vm1, %v1710_v53 }
 0x102   : > { %v610_v33 = vpack.c.b16 %v594_v31, %v594_v31  ;;  %781 = vmatpush.bf16.msra.mxu3 %v773_v32 }
 0x104   : > { %v644_v34 = vsel %vm621_vm0, %v1663_v1, %v610_v33 }
 0x105   : > { %v467_v37 = vpop.f32.mrf.mxu0 }
 0x106   : > { %v547_v38 = vpack.c.bf16 %v467_v37, %v467_v37  ;;  %v516_v39 = vpop.f32.mrf.mxu1  ;;  %782 = vmatpush.bf16.msra.mxu3 %v644_v34 }
 0x107   : > { %v563_v0 = vpack.c.bf16 %v516_v39, %v516_v39 }
 0x108   : > { %v595_v40 = vunpack.c.l.b16 %v547_v38 }
 0x109   : > { %v789_v41 = vsel %vm621_vm0, %v563_v0, 0  ;;  %1166 = vmatmul.msk.bf16.vlgmr.msra.gmra.mxu3 %vm688_vm1, %v1710_v53 }
 0x10a   : > { %v611_v44 = vpack.c.b16 %v595_v40, %v595_v40  ;;  %797 = vmatpush.bf16.msrb.mxu2 %v789_v41 }
 0x10c   : > { %v648_v45 = vsel %vm621_vm0, %v1669_v7, %v611_v44 }
 0x10d   : > { %v469_v46 = vpop.f32.mrf.mxu0 }
 0x10e   : > { %v548_v47 = vpack.c.bf16 %v469_v46, %v469_v46  ;;  %v518_v48 = vpop.f32.mrf.mxu1  ;;  %798 = vmatpush.bf16.msrb.mxu2 %v648_v45 }
 0x10f   : > { %v564_v1 = vpack.c.bf16 %v518_v48, %v518_v48 }
 0x110   : > { %v596_v49 = vunpack.c.l.b16 %v548_v47 }
 0x111   : > { %v805_v50 = vsel %vm621_vm0, %v564_v1, 0  ;;  %1167 = vmatmul.msk.bf16.vlgmr.msrb.gmra.mxu2 %vm688_vm1, %v1710_v53 }
 0x112   : > { %v612_v51 = vpack.c.b16 %v596_v49, %v596_v49  ;;  %813 = vmatpush.bf16.msrb.mxu3 %v805_v50 }
 0x114   : > { %v652_v52 = vsel %vm621_vm0, %v1671_v8, %v612_v51 }
 0x115   : > { %v472_v54 = vpop.f32.mrf.mxu0 }
 0x116   : > { %v549_v55 = vpack.c.bf16 %v472_v54, %v472_v54  ;;  %v521_v56 = vpop.f32.mrf.mxu1  ;;  %814 = vmatpush.bf16.msrb.mxu3 %v652_v52 }
 0x117   : > { %v565_v7 = vpack.c.bf16 %v521_v56, %v521_v56 }
 0x118   : > { %v597_v59 = vunpack.c.l.b16 %v549_v55 }
 0x119   : > { %v821_v60 = vsel %vm621_vm0, %v565_v7, 0  ;;  %1168 = vmatmul.msk.bf16.vlgmr.msrb.gmra.mxu3 %vm688_vm1, %v1710_v53 }
 0x11a   : > { %v613_v42 = vpack.c.b16 %v597_v59, %v597_v59  ;;  %829 = vmatpush.bf16.msra.mxu2 %v821_v60 }
 0x11c   : > { %v656_v61 = vsel %vm621_vm0, %v1677_v14, %v613_v42 }
 0x11d   : > { %v474_v62 = vpop.f32.mrf.mxu0 }
 0x11e   : > { %v550_v63 = vpack.c.bf16 %v474_v62, %v474_v62  ;;  %v523_v2 = vpop.f32.mrf.mxu1  ;;  %830 = vmatpush.bf16.msra.mxu2 %v656_v61 }
 0x11f   : > { %v566_v8 = vpack.c.bf16 %v523_v2, %v523_v2 }
 0x120   : > { %v598_v3 = vunpack.c.l.b16 %v550_v63 }
 0x121   : > { %v837_v4 = vsel %vm621_vm0, %v566_v8, 0  ;;  %1169 = vmatmul.msk.bf16.vlgmr.msra.gmra.mxu2 %vm688_vm1, %v1710_v53 }
 0x122   : > { %v614_v5 = vpack.c.b16 %v598_v3, %v598_v3  ;;  %845 = vmatpush.bf16.msra.mxu3 %v837_v4 }
 0x124   : > { %v660_v6 = vsel %vm621_vm0, %v1679_v15, %v614_v5 }
 0x125   : > { %v477_v9 = vpop.f32.mrf.mxu0 }
 0x126   : > { %v551_v10 = vpack.c.bf16 %v477_v9, %v477_v9  ;;  %v526_v43 = vpop.f32.mrf.mxu1  ;;  %846 = vmatpush.bf16.msra.mxu3 %v660_v6 }
 0x127   : > { %v567_v14 = vpack.c.bf16 %v526_v43, %v526_v43 }
 0x128   : > { %v599_v11 = vunpack.c.l.b16 %v551_v10 }
 0x129   : > { %v853_v12 = vsel %vm621_vm0, %v567_v14, 0  ;;  %1170 = vmatmul.msk.bf16.vlgmr.msra.gmra.mxu3 %vm688_vm1, %v1710_v53 }
 0x12a   : > { %v615_v13 = vpack.c.b16 %v599_v11, %v599_v11  ;;  %861 = vmatpush.bf16.msrb.mxu2 %v853_v12 }
 0x12c   : > { %v664_v16 = vsel %vm621_vm0, %v1685_v21, %v615_v13 }
 0x12d   : > { %v479_v17 = vpop.f32.mrf.mxu0 }
 0x12e   : > { %v552_v18 = vpack.c.bf16 %v479_v17, %v479_v17  ;;  %v528_v19 = vpop.f32.mrf.mxu1  ;;  %862 = vmatpush.bf16.msrb.mxu2 %v664_v16 }
 0x12f   : > { %v568_v15 = vpack.c.bf16 %v528_v19, %v528_v19 }
 0x130   : > { %v600_v57 = vunpack.c.l.b16 %v552_v18 }
 0x131   : > { %v869_v20 = vsel %vm621_vm0, %v568_v15, 0  ;;  %1171 = vmatmul.msk.bf16.vlgmr.msrb.gmra.mxu2 %vm688_vm1, %v1710_v53 }
 0x132   : > { %v616_v23 = vpack.c.b16 %v600_v57, %v600_v57  ;;  %877 = vmatpush.bf16.msrb.mxu3 %v869_v20 }
 0x134   : > { %v668_v24 = vsel %vm621_vm0, %v1687_v22, %v616_v23 }
 0x135   : > { %v482_v25 = vpop.f32.mrf.mxu0 }
 0x136   : > { %v553_v26 = vpack.c.bf16 %v482_v25, %v482_v25  ;;  %v531_v27 = vpop.f32.mrf.mxu1  ;;  %878 = vmatpush.bf16.msrb.mxu3 %v668_v24 }
 0x137   : > { %v569_v21 = vpack.c.bf16 %v531_v27, %v531_v27 }
 0x138   : > { %v601_v30 = vunpack.c.l.b16 %v553_v26 }
 0x139   : > { %v885_v58 = vsel %vm621_vm0, %v569_v21, 0  ;;  %1172 = vmatmul.msk.bf16.vlgmr.msrb.gmra.mxu3 %vm688_vm1, %v1710_v53 }
 0x13a   : > { %v617_v31 = vpack.c.b16 %v601_v30, %v601_v30  ;;  %893 = vmatpush.bf16.msra.mxu2 %v885_v58 }
 0x13c   : > { %v672_v32 = vsel %vm621_vm0, %v1693_v28, %v617_v31 }
 0x13d   : > { %v484_v33 = vpop.f32.mrf.mxu0 }
 0x13e   : > { %v554_v34 = vpack.c.bf16 %v484_v33, %v484_v33  ;;  %v533_v37 = vpop.f32.mrf.mxu1  ;;  %894 = vmatpush.bf16.msra.mxu2 %v672_v32 }
 0x13f   : > { %v570_v22 = vpack.c.bf16 %v533_v37, %v533_v37 }
 0x140   : > { %v602_v38 = vunpack.c.l.b16 %v554_v34 }
 0x141   : > { %v901_v39 = vsel %vm621_vm0, %v570_v22, 0  ;;  %1173 = vmatmul.msk.bf16.vlgmr.msra.gmra.mxu2 %vm688_vm1, %v1710_v53 }
 0x142   : > { %v618_v0 = vpack.c.b16 %v602_v38, %v602_v38  ;;  %909 = vmatpush.bf16.msra.mxu3 %v901_v39 }
 0x144   : > { %v676_v40 = vsel %vm621_vm0, %v1695_v29, %v618_v0 }
 0x145   : > { %v487_v41 = vpop.f32.mrf.mxu0 }
 0x146   : > { %v555_v44 = vpack.c.bf16 %v487_v41, %v487_v41  ;;  %v536_v45 = vpop.f32.mrf.mxu1  ;;  %910 = vmatpush.bf16.msra.mxu3 %v676_v40 }
 0x147   : > { %v571_v28 = vpack.c.bf16 %v536_v45, %v536_v45 }
 0x148   : > { %v603_v46 = vunpack.c.l.b16 %v555_v44 }
 0x149   : > { %v917_v47 = vsel %vm621_vm0, %v571_v28, 0  ;;  %1174 = vmatmul.msk.bf16.vlgmr.msra.gmra.mxu3 %vm688_vm1, %v1710_v53 }
 0x14a   : > { %v619_v48 = vpack.c.b16 %v603_v46, %v603_v46  ;;  %925 = vmatpush.bf16.msrb.mxu2 %v917_v47 }
 0x14c   : > { %v680_v1 = vsel %vm621_vm0, %v1701_v35, %v619_v48  ;;  %v1789_v35 = vld [vmem:[#allocation8] sm:$0xff] }
 0x14d   : > { %v489_v49 = vpop.f32.mrf.mxu0 }
 0x14e   : > { %v556_v50 = vpack.c.bf16 %v489_v49, %v489_v49  ;;  %v538_v29 = vpop.f32.mrf.mxu1  ;;  %926 = vmatpush.bf16.msrb.mxu2 %v680_v1 }
 0x14f   : > { %v572_v51 = vpack.c.bf16 %v538_v29, %v538_v29 }
 0x150   : > { %v604_v52 = vunpack.c.l.b16 %v556_v50 }
 0x151   : > { %v933_v54 = vsel %vm621_vm0, %v572_v51, 0  ;;  %1175 = vmatmul.msk.bf16.vlgmr.msrb.gmra.mxu2 %vm688_vm1, %v1710_v53 }
 0x152   : > { %v620_v55 = vpack.c.b16 %v604_v52, %v604_v52  ;;  %941 = vmatpush.bf16.msrb.mxu3 %v933_v54 }
 0x154   : > { %v684_v56 = vsel %vm621_vm0, %v1703_v36, %v620_v55 }
 0x156   : > { %942 = vmatpush.bf16.msrb.mxu3 %v684_v56 }
 0x159   : > { %1176 = vmatmul.msk.bf16.vlgmr.msrb.gmra.mxu3 %vm688_vm1, %v1710_v53 }
 0x164   : > { %v704_v7 = vpop.f32.mrf.mxu2 }
 0x165   : > { %v705_v59 = vadd.f32 %v704_v7, %v1789_v35 }
 0x167   : > { %948 = vst [vmem:[%s1794_s21] sm:$0xff] %v705_v59 }
 0x16c   : > { %v720_v60 = vpop.f32.mrf.mxu3  ;;  %v706_v36 = vpop.f32.mrf.mxu2 }
 0x16d   : > { %v721_v42 = vadd.f32 %v720_v60, %v1789_v35 }
 0x16f   : > { %949 = vst [vmem:[%s1794_s21 + $0x8] sm:$0xff] %v721_v42 }
 0x174   : > { %v722_v53 = vpop.f32.mrf.mxu3  ;;  %v736_v61 = vpop.f32.mrf.mxu2 }
 0x175   : > { %v737_v62 = vadd.f32 %v736_v61, %v1789_v35 }
 0x177   : > { %950 = vst [vmem:[%s1794_s21 + $0x10] sm:$0xff] %v737_v62 }
 0x17c   : > { %v752_v63 = vpop.f32.mrf.mxu3  ;;  %v738_v2 = vpop.f32.mrf.mxu2 }
 0x17d   : > { %v753_v8 = vadd.f32 %v752_v63, %v1789_v35 }
 0x17f   : > { %951 = vst [vmem:[%s1794_s21 + $0x18] sm:$0xff] %v753_v8 }
 0x184   : > { %v754_v3 = vpop.f32.mrf.mxu3  ;;  %v768_v4 = vpop.f32.mrf.mxu2 }
 0x185   : > { %v769_v5 = vadd.f32 %v768_v4, %v1789_v35 }
 0x187   : > { %952 = vst [vmem:[%s1794_s21 + $0x20] sm:$0xff] %v769_v5 }
 0x18c   : > { %v784_v6 = vpop.f32.mrf.mxu3  ;;  %v770_v9 = vpop.f32.mrf.mxu2 }
 0x18d   : > { %v785_v10 = vadd.f32 %v784_v6, %v1789_v35 }
 0x18f   : > { %953 = vst [vmem:[%s1794_s21 + $0x28] sm:$0xff] %v785_v10 }
 0x194   : > { %v786_v43 = vpop.f32.mrf.mxu3  ;;  %v800_v14 = vpop.f32.mrf.mxu2 }
 0x195   : > { %v801_v11 = vadd.f32 %v800_v14, %v1789_v35 }
 0x197   : > { %954 = vst [vmem:[%s1794_s21 + $0x30] sm:$0xff] %v801_v11 }
 0x19c   : > { %v816_v12 = vpop.f32.mrf.mxu3  ;;  %v802_v13 = vpop.f32.mrf.mxu2 }
 0x19d   : > { %v817_v16 = vadd.f32 %v816_v12, %v1789_v35 }
 0x19f   : > { %955 = vst [vmem:[%s1794_s21 + $0x38] sm:$0xff] %v817_v16 }
 0x1a4   : > { %v818_v17 = vpop.f32.mrf.mxu3  ;;  %v832_v18 = vpop.f32.mrf.mxu2 }
 0x1a5   : > { %v833_v19 = vadd.f32 %v832_v18, %v1789_v35 }
 0x1a7   : > { %956 = vst [vmem:[%s1794_s21 + $0x40] sm:$0xff] %v833_v19 }
 0x1ac   : > { %v848_v15 = vpop.f32.mrf.mxu3  ;;  %v834_v57 = vpop.f32.mrf.mxu2 }
 0x1ad   : > { %v849_v20 = vadd.f32 %v848_v15, %v1789_v35 }
 0x1af   : > { %957 = vst [vmem:[%s1794_s21 + $0x48] sm:$0xff] %v849_v20 }
 0x1b4   : > { %v850_v23 = vpop.f32.mrf.mxu3  ;;  %v864_v24 = vpop.f32.mrf.mxu2 }
 0x1b5   : > { %v865_v25 = vadd.f32 %v864_v24, %v1789_v35 }
 0x1b7   : > { %958 = vst [vmem:[%s1794_s21 + $0x50] sm:$0xff] %v865_v25 }
 0x1bc   : > { %v880_v26 = vpop.f32.mrf.mxu3  ;;  %v866_v27 = vpop.f32.mrf.mxu2 }
 0x1bd   : > { %v881_v21 = vadd.f32 %v880_v26, %v1789_v35 }
 0x1bf   : > { %959 = vst [vmem:[%s1794_s21 + $0x58] sm:$0xff] %v881_v21 }
 0x1c4   : > { %v882_v30 = vpop.f32.mrf.mxu3  ;;  %v896_v58 = vpop.f32.mrf.mxu2 }
 0x1c5   : > { %v897_v31 = vadd.f32 %v896_v58, %v1789_v35 }
 0x1c7   : > { %960 = vst [vmem:[%s1794_s21 + $0x60] sm:$0xff] %v897_v31 }
 0x1cc   : > { %v912_v32 = vpop.f32.mrf.mxu3  ;;  %v898_v33 = vpop.f32.mrf.mxu2 }
 0x1cd   : > { %v913_v34 = vadd.f32 %v912_v32, %v1789_v35 }
 0x1cf   : > { %961 = vst [vmem:[%s1794_s21 + $0x68] sm:$0xff] %v913_v34 }
 0x1d4   : > { %v914_v37 = vpop.f32.mrf.mxu3  ;;  %v928_v22 = vpop.f32.mrf.mxu2 }
 0x1d5   : > { %v929_v38 = vadd.f32 %v928_v22, %v1789_v35 }
 0x1d7   : > { %962 = vst [vmem:[%s1794_s21 + $0x70] sm:$0xff] %v929_v38 }
 0x1dc   : > { %v944_v39 = vpop.f32.mrf.mxu3  ;;  %v930_v0 = vpop.f32.mrf.mxu2 }
 0x1dd   : > { %v945_v40 = vadd.f32 %v944_v39, %v1789_v35 }
 0x1df   : > { %963 = vst [vmem:[%s1794_s21 + $0x78] sm:$0xff] %v945_v40 }
 0x1e0   : > { %1428 = shalt.err (!%p1425_p10)
}
 0x1e1   : > { %s1482_s30 = smov 128   ;;  %s1483_s24 = smov 8  }
 0x1e2   : > { %1214 = dma.vmem_to_hbm [thread:$0]  (%p1593_p0), %s978_s13, 2048, %s980_s14, %s965_s19, %s1482_s30, %s1482_s30, %s1483_s24  }
 0x1e4   : > { %v946_v41 = vpop.f32.mrf.mxu3 }
 0x1e5 PF: > { %p1241_p11 = scmp.ge.s32.totalorder %s1475_s18, 2  ;;  %s994_s25 = sand.u32 1, %s1463_s15  }
 0x1e6   : > { %s995_s21 = scalar_lea.sflag [#allocation4], %s994_s25 }
 0x1e7   : > { %p1231_p12 = pnand %p1241_p11, %p1544_p6 }
 0x1e9   : > { %p1232_p13 = pneg %p1231_p12 }
 0x1eb   : > { %1458 = dma.done.wait (%p1232_p13), %s995_s21, 2048  }
 0x1ec   : > { %1460 = vsyncadd (%p1232_p13), %s995_s21, 4294965248  ;;  %p19_p3 = scmp.ge.s32.totalorder %s1578_s23, 6   ;;  %s1871_s15 = smov %s1467_s16 }
 0x1ed   : > { %s1872_s16 = smov %s1471_s17  ;;  %s1873_s17 = smov %s1589_s27 }
 0x1ee   : > { %s1874_s18 = smov %s1578_s23  ;;  %21 = sbr.rel (!%p19_p3) target bundleno = 7 (0x7), region = 93 }
 0x1f3   :  { %1001 = vsyncpa [#allocation3], 1 }
 0x1f4   :  { %1003 = vsyncpa [#allocation3 + $0x1], 1 }
 0x1f5   :  { %1004 = vsyncpa [#allocation6], 1 }
 0x1f6   :  { %1005 = vsyncpa [#allocation9], 1 }
 0x1f7   :  { %1006 = vsyncpa [#allocation4], 1 }
 0x1f8   :  { %1008 = vsyncpa [#allocation4 + $0x1], 1 }

</bundles_post_ra>
